<compile_context>
chip_gen: v5e
topology: v5e:2x2
jax: 0.10.0
libtpu: 0.0.40
codegen_flags: <defaults>
</compile_context>

<pallas_src>
import functools

import jax
import jax.numpy as jnp
from jax.experimental import pallas as pl
from jax.experimental.pallas import tpu as pltpu

FEATURES = 32          # F: hidden width of the coupling net
_MAX_TILE_N = 32768    # samples per grid step upper bound


# --------------------------------------------------------------------------
# Hardware heuristics (best effort; only affect tiling, never correctness).
# --------------------------------------------------------------------------
_NUM_TC_CACHE = None
_GROUPS_CACHE = None


def _num_tensorcores():
    """TensorCores per chip: 2 on v7x, 1 on v5e/v6e (best effort)."""
    global _NUM_TC_CACHE
    if _NUM_TC_CACHE is not None:
        return _NUM_TC_CACHE
    n = 0
    try:
        info = pltpu.get_tpu_info()
        for attr in ("num_tensorcores", "tensorcores_per_chip", "num_cores",
                     "cores_per_chip"):
            val = getattr(info, attr, None)
            if isinstance(val, int) and val > 0:
                n = val
                break
    except Exception:
        n = 0
    if n <= 0:
        try:
            kind = jax.devices()[0].device_kind.lower()
            n = 2 if "v7" in kind else 1
        except Exception:
            n = 1
    _NUM_TC_CACHE = n
    return n


def _mxu_fold_groups():
    """Batch-fold factor G: fill a 256-wide MXU (v6e/v7x) or 128-wide (v5e)."""
    global _GROUPS_CACHE
    if _GROUPS_CACHE is not None:
        return _GROUPS_CACHE
    g = 8
    try:
        kind = jax.devices()[0].device_kind.lower()
        if ("v5e" in kind) or ("v5 lite" in kind) or ("v5lite" in kind):
            g = 4
    except Exception:
        g = 8
    _GROUPS_CACHE = g
    return g


# --------------------------------------------------------------------------
# Kernel
# --------------------------------------------------------------------------
def coupling_kernel(x_ref, consts_ref, w2bd_ref, out_ref, *, groups):
    F = FEATURES
    G = groups

    x = x_ref[...]                       # (G, TC) f32, batch on lanes
    c = consts_ref[...]                  # (F, 6) packed small constants, f32

    w1c = c[:, 0:1]                      # (F, 1) Linear(1, F) weight column
    b1c = c[:, 1:2]                      # (F, 1)
    b2c = c[:, 2:3]                      # (F, 1)
    w3s = c[:, 3:4]                      # (F, 1) s-projection weights
    w3t = c[:, 4:5]                      # (F, 1) t-projection weights
    b3s = c[0:1, 5:6]                    # (1, 1)
    b3t = c[1:2, 5:6]                    # (1, 1)

    # ---- Layer 1 (VPU, f32): K=1 "matmul" as a broadcast MAC per group. ----
    h1_groups = []
    for g in range(G):                   # static unroll, G is 4 or 8
        xg = x[g:g + 1, :]               # (1, TC)
        h1_groups.append(jnp.maximum(w1c * xg + b1c, 0.0))      # (F, TC)
    h1 = jnp.concatenate(h1_groups, axis=0)                      # (G*F, TC)

    # ---- Layer 2 (MXU, bf16 operands, f32 accumulate). ----
    # Block-diagonal batch fold: (G*F, G*F) @ (G*F, TC) fills M and K of the
    # MXU and streams G-times fewer columns than (F, F) @ (F, G*TC).
    h2 = jnp.dot(w2bd_ref[...], h1.astype(jnp.bfloat16),
                 preferred_element_type=jnp.float32)             # (G*F, TC) f32

    # ---- Layer 3 (VPU + XLU, f32): per-group weighted sublane reduction. ----
    s_rows = []
    t_rows = []
    for g in range(G):
        h2g = jnp.maximum(h2[g * F:(g + 1) * F, :] + b2c, 0.0)   # (F, TC)
        s_rows.append(jnp.sum(h2g * w3s, axis=0, keepdims=True))  # (1, TC)
        t_rows.append(jnp.sum(h2g * w3t, axis=0, keepdims=True))  # (1, TC)
    s = jnp.concatenate(s_rows, axis=0) + b3s                    # (G, TC)
    t = jnp.concatenate(t_rows, axis=0) + b3t                    # (G, TC)

    # Lane-dense, unmasked stores (8 B/sample HBM writeback).
    out_ref[0, :, :] = s.astype(out_ref.dtype)
    out_ref[1, :, :] = t.astype(out_ref.dtype)


# --------------------------------------------------------------------------
# Parameter packing
# --------------------------------------------------------------------------
def pack_params(params, groups, features=FEATURES):
    """Repack logical (in, out)-layout params into the kernel's layout."""
    w1, b1, w2, b2, w3, b3 = params
    consts = jnp.zeros((features, 6), jnp.float32)
    consts = consts.at[:, 0].set(w1[0, :].astype(jnp.float32))   # Linear(1, F) weight
    consts = consts.at[:, 1].set(b1[0, :].astype(jnp.float32))   # bias 1
    consts = consts.at[:, 2].set(b2[0, :].astype(jnp.float32))   # bias 2
    consts = consts.at[:, 3].set(w3[:, 0].astype(jnp.float32))   # s weights
    consts = consts.at[:, 4].set(w3[:, 1].astype(jnp.float32))   # t weights
    consts = consts.at[0:2, 5].set(b3[0, :].astype(jnp.float32))  # bias 3
    # Block-diagonal (G*F, G*F) copies of w2^T, stored bf16 for the MXU.
    w2bd = jnp.kron(jnp.eye(groups, dtype=jnp.float32),
                    w2.T.astype(jnp.float32)).astype(jnp.bfloat16)
    return consts, w2bd


# --------------------------------------------------------------------------
# Wrapper
# --------------------------------------------------------------------------
def coupling_net_forward(x, params, *, tile_n=16384):
    """x: (N,) float.  Returns (s, t), each (N,) float32."""
    n = x.shape[0]
    G = _mxu_fold_groups()
    consts, w2bd = pack_params(params, G)

    chunk = G * 128                      # minimum lane-dense step (samples)
    tile_n = max(chunk, min(int(tile_n), _MAX_TILE_N))
    tile_n = (tile_n // chunk) * chunk

    n_chunks = pl.cdiv(n, chunk)
    num_steps = pl.cdiv(n_chunks, tile_n // chunk)

    # Only force a multi-step grid on 2-TensorCore parts (v7x); keep the step
    # count even so the "parallel" axis splits evenly across both cores.
    if _num_tensorcores() >= 2 and n_chunks >= 2:
        num_steps = max(num_steps, 2)
        if num_steps % 2:
            num_steps += 1

    chunks_per_step = pl.cdiv(n_chunks, num_steps)
    tile_n = chunks_per_step * chunk
    n_pad = num_steps * tile_n
    tc = tile_n // G                     # lane columns per step (multiple of 128)
    nc = n_pad // G

    xf = x.astype(jnp.float32).reshape(-1)
    if n_pad != n:
        xf = jnp.pad(xf, (0, n_pad - n))   # tail-only pad (no full zero-init copy)
    x2d = xf.reshape(G, nc)                # row-major fold: layout-free reshape

    kernel = functools.partial(coupling_kernel, groups=G)

    out = pl.pallas_call(
        kernel,
        out_shape=jax.ShapeDtypeStruct((2, G, nc), jnp.float32),
        grid_spec=pltpu.PrefetchScalarGridSpec(
            num_scalar_prefetch=0,
            grid=(num_steps,),
            in_specs=[
                pl.BlockSpec((G, tc), lambda i: (0, i)),                      # folded x
                pl.BlockSpec((FEATURES, 6), lambda i: (0, 0)),                # packed consts
                pl.BlockSpec((G * FEATURES, G * FEATURES), lambda i: (0, 0)),  # block-diag w2^T
            ],
            out_specs=pl.BlockSpec((2, G, tc), lambda i: (0, 0, i)),
        ),
        compiler_params=pltpu.CompilerParams(
            dimension_semantics=("parallel",),
            vmem_limit_bytes=32 * 1024 * 1024),
    )(x2d, consts, w2bd)

    # Contiguous unfold of the (2, G, N/G) packed output; no strided gather.
    flat = out.reshape(2, n_pad)
    s = flat[0, :n]
    t = flat[1, :n]
    return s, t


# --------------------------------------------------------------------------
# Synthetic params + plain-JAX reference
# --------------------------------------------------------------------------
def init_params(key, features=FEATURES):
    """Deterministic synthetic parameters matching the PyTorch module shapes.

    Stored in (in_features, out_features) layout (transposed vs. nn.Linear's
    (out, in)); the kernel repacks them into its channel-major layout.
    """
    k1, k2, k3, k4, k5, k6 = jax.random.split(key, 6)
    w1 = jax.random.normal(k1, (1, features), jnp.float32) * 0.5
    b1 = jax.random.normal(k2, (1, features), jnp.float32) * 0.1
    w2 = jax.random.normal(k3, (features, features), jnp.float32) * (1.0 / features ** 0.5)
    b2 = jax.random.normal(k4, (1, features), jnp.float32) * 0.1
    w3 = jax.random.normal(k5, (features, 2), jnp.float32) * (1.0 / features ** 0.5)
    b3 = jax.random.normal(k6, (1, 2), jnp.float32) * 0.1
    return (w1, b1, w2, b2, w3, b3)


def reference_forward(x, params):
    """Plain-JAX (all-f32) reference matching the PyTorch forward exactly."""
    w1, b1, w2, b2, w3, b3 = params
    h = x.reshape(-1, 1)
    h = jnp.maximum(h @ w1 + b1, 0.0)
    h = jnp.maximum(h @ w2 + b2, 0.0)
    s_t = h @ w3 + b3
    return s_t[:, 0], s_t[:, 1]


if __name__ == "__main__":
    # TODO(synk): the original script loads (X, Y) from 'data.tar' via torch.load;
    # here we synthesize an equivalent flattened sample vector instead.
    key = jax.random.PRNGKey(0)
    pkey, xkey = jax.random.split(key)
    params = init_params(pkey)

    N = 256  # small demo batch of flattened samples
    x = jax.random.normal(xkey, (N,), jnp.float32)
    s, t = coupling_net_forward(x, params)
    jax.block_until_ready((s, t))

    s_ref, t_ref = reference_forward(x, params)
    assert s.shape == (N,) and t.shape == (N,)
    # Layer-2 MXU operands are bf16 (f32 accumulation), so compare against the
    # all-f32 reference with relaxed tolerances.
    assert jnp.allclose(s, s_ref, atol=5e-2, rtol=5e-2)
    assert jnp.allclose(t, t_ref, atol=5e-2, rtol=5e-2)

    # Non-multiple-of-(G*128) batch exercises the padded-tail path.
    N2 = 100
    x2 = jax.random.normal(jax.random.PRNGKey(7), (N2,), jnp.float32)
    s2, t2 = coupling_net_forward(x2, params)
    jax.block_until_ready((s2, t2))
    s2_ref, t2_ref = reference_forward(x2, params)
    assert jnp.allclose(s2, s2_ref, atol=5e-2, rtol=5e-2)
    assert jnp.allclose(t2, t2_ref, atol=5e-2, rtol=5e-2)

    print("KERNEL_OK")
</pallas_src>

<mosaic_0001>
module attributes {stable_mosaic.version = 11 : i64} {
  func.func @coupling_kernel(%arg0: i32, %arg1: memref<8x128xf32, #tpu.memory_space<vmem>>, %arg2: memref<32x6xf32, #tpu.memory_space<vmem>>, %arg3: memref<256x256xbf16, #tpu.memory_space<vmem>>, %arg4: memref<2x8x128xf32, #tpu.memory_space<vmem>>) attributes {dimension_semantics = [#tpu.dimension_semantics<parallel>], iteration_bounds = array<i64: 1>, scalar_prefetch = 0 : i64, scratch_operands = 0 : i64, tpu.core_type = #tpu.core_type<tc>, window_params = [{transform_indices = @transform_0, window_bounds = array<i64: 8, 128>}, {pipeline_mode = #tpu.pipeline_mode<synchronous>, transform_indices = @transform_1, window_bounds = array<i64: 32, 6>}, {pipeline_mode = #tpu.pipeline_mode<synchronous>, transform_indices = @transform_2, window_bounds = array<i64: 256, 256>}, {transform_indices = @transform_3, window_bounds = array<i64: 2, 8, 128>}]} {
    %c0 = arith.constant 0 : index
    %c0_0 = arith.constant 0 : index
    %0 = vector.load %arg1[%c0, %c0_0] : memref<8x128xf32, #tpu.memory_space<vmem>>, vector<8x128xf32>
    %c0_1 = arith.constant 0 : index
    %c0_2 = arith.constant 0 : index
    %1 = vector.load %arg2[%c0_1, %c0_2] : memref<32x6xf32, #tpu.memory_space<vmem>>, vector<32x6xf32>
    %2 = vector.extract_strided_slice %1 {offsets = [0, 0], sizes = [32, 1], strides = [1, 1]} : vector<32x6xf32> to vector<32x1xf32>
    %3 = vector.extract_strided_slice %1 {offsets = [0, 1], sizes = [32, 1], strides = [1, 1]} : vector<32x6xf32> to vector<32x1xf32>
    %4 = vector.extract_strided_slice %1 {offsets = [0, 2], sizes = [32, 1], strides = [1, 1]} : vector<32x6xf32> to vector<32x1xf32>
    %5 = vector.extract_strided_slice %1 {offsets = [0, 3], sizes = [32, 1], strides = [1, 1]} : vector<32x6xf32> to vector<32x1xf32>
    %6 = vector.extract_strided_slice %1 {offsets = [0, 4], sizes = [32, 1], strides = [1, 1]} : vector<32x6xf32> to vector<32x1xf32>
    %7 = vector.extract_strided_slice %1 {offsets = [0, 5], sizes = [1, 1], strides = [1, 1]} : vector<32x6xf32> to vector<1x1xf32>
    %8 = vector.extract_strided_slice %1 {offsets = [1, 5], sizes = [1, 1], strides = [1, 1]} : vector<32x6xf32> to vector<1x1xf32>
    %9 = vector.extract_strided_slice %0 {offsets = [0, 0], sizes = [1, 128], strides = [1, 1]} : vector<8x128xf32> to vector<1x128xf32>
    %10 = vector.broadcast %2 : vector<32x1xf32> to vector<32x128xf32>
    %11 = vector.broadcast %9 : vector<1x128xf32> to vector<32x128xf32>
    %12 = arith.mulf %10, %11 : vector<32x128xf32>
    %13 = vector.broadcast %3 : vector<32x1xf32> to vector<32x128xf32>
    %14 = arith.addf %12, %13 : vector<32x128xf32>
    %cst = arith.constant 0.000000e+00 : f32
    %15 = vector.broadcast %cst : f32 to vector<32x128xf32>
    %16 = arith.maximumf %14, %15 : vector<32x128xf32>
    %17 = vector.extract_strided_slice %0 {offsets = [1, 0], sizes = [1, 128], strides = [1, 1]} : vector<8x128xf32> to vector<1x128xf32>
    %18 = vector.broadcast %2 : vector<32x1xf32> to vector<32x128xf32>
    %19 = vector.broadcast %17 : vector<1x128xf32> to vector<32x128xf32>
    %20 = arith.mulf %18, %19 : vector<32x128xf32>
    %21 = vector.broadcast %3 : vector<32x1xf32> to vector<32x128xf32>
    %22 = arith.addf %20, %21 : vector<32x128xf32>
    %cst_3 = arith.constant 0.000000e+00 : f32
    %23 = vector.broadcast %cst_3 : f32 to vector<32x128xf32>
    %24 = arith.maximumf %22, %23 : vector<32x128xf32>
    %25 = vector.extract_strided_slice %0 {offsets = [2, 0], sizes = [1, 128], strides = [1, 1]} : vector<8x128xf32> to vector<1x128xf32>
    %26 = vector.broadcast %2 : vector<32x1xf32> to vector<32x128xf32>
    %27 = vector.broadcast %25 : vector<1x128xf32> to vector<32x128xf32>
    %28 = arith.mulf %26, %27 : vector<32x128xf32>
    %29 = vector.broadcast %3 : vector<32x1xf32> to vector<32x128xf32>
    %30 = arith.addf %28, %29 : vector<32x128xf32>
    %cst_4 = arith.constant 0.000000e+00 : f32
    %31 = vector.broadcast %cst_4 : f32 to vector<32x128xf32>
    %32 = arith.maximumf %30, %31 : vector<32x128xf32>
    %33 = vector.extract_strided_slice %0 {offsets = [3, 0], sizes = [1, 128], strides = [1, 1]} : vector<8x128xf32> to vector<1x128xf32>
    %34 = vector.broadcast %2 : vector<32x1xf32> to vector<32x128xf32>
    %35 = vector.broadcast %33 : vector<1x128xf32> to vector<32x128xf32>
    %36 = arith.mulf %34, %35 : vector<32x128xf32>
    %37 = vector.broadcast %3 : vector<32x1xf32> to vector<32x128xf32>
    %38 = arith.addf %36, %37 : vector<32x128xf32>
    %cst_5 = arith.constant 0.000000e+00 : f32
    %39 = vector.broadcast %cst_5 : f32 to vector<32x128xf32>
    %40 = arith.maximumf %38, %39 : vector<32x128xf32>
    %41 = vector.extract_strided_slice %0 {offsets = [4, 0], sizes = [1, 128], strides = [1, 1]} : vector<8x128xf32> to vector<1x128xf32>
    %42 = vector.broadcast %2 : vector<32x1xf32> to vector<32x128xf32>
    %43 = vector.broadcast %41 : vector<1x128xf32> to vector<32x128xf32>
    %44 = arith.mulf %42, %43 : vector<32x128xf32>
    %45 = vector.broadcast %3 : vector<32x1xf32> to vector<32x128xf32>
    %46 = arith.addf %44, %45 : vector<32x128xf32>
    %cst_6 = arith.constant 0.000000e+00 : f32
    %47 = vector.broadcast %cst_6 : f32 to vector<32x128xf32>
    %48 = arith.maximumf %46, %47 : vector<32x128xf32>
    %49 = vector.extract_strided_slice %0 {offsets = [5, 0], sizes = [1, 128], strides = [1, 1]} : vector<8x128xf32> to vector<1x128xf32>
    %50 = vector.broadcast %2 : vector<32x1xf32> to vector<32x128xf32>
    %51 = vector.broadcast %49 : vector<1x128xf32> to vector<32x128xf32>
    %52 = arith.mulf %50, %51 : vector<32x128xf32>
    %53 = vector.broadcast %3 : vector<32x1xf32> to vector<32x128xf32>
    %54 = arith.addf %52, %53 : vector<32x128xf32>
    %cst_7 = arith.constant 0.000000e+00 : f32
    %55 = vector.broadcast %cst_7 : f32 to vector<32x128xf32>
    %56 = arith.maximumf %54, %55 : vector<32x128xf32>
    %57 = vector.extract_strided_slice %0 {offsets = [6, 0], sizes = [1, 128], strides = [1, 1]} : vector<8x128xf32> to vector<1x128xf32>
    %58 = vector.broadcast %2 : vector<32x1xf32> to vector<32x128xf32>
    %59 = vector.broadcast %57 : vector<1x128xf32> to vector<32x128xf32>
    %60 = arith.mulf %58, %59 : vector<32x128xf32>
    %61 = vector.broadcast %3 : vector<32x1xf32> to vector<32x128xf32>
    %62 = arith.addf %60, %61 : vector<32x128xf32>
    %cst_8 = arith.constant 0.000000e+00 : f32
    %63 = vector.broadcast %cst_8 : f32 to vector<32x128xf32>
    %64 = arith.maximumf %62, %63 : vector<32x128xf32>
    %65 = vector.extract_strided_slice %0 {offsets = [7, 0], sizes = [1, 128], strides = [1, 1]} : vector<8x128xf32> to vector<1x128xf32>
    %66 = vector.broadcast %2 : vector<32x1xf32> to vector<32x128xf32>
    %67 = vector.broadcast %65 : vector<1x128xf32> to vector<32x128xf32>
    %68 = arith.mulf %66, %67 : vector<32x128xf32>
    %69 = vector.broadcast %3 : vector<32x1xf32> to vector<32x128xf32>
    %70 = arith.addf %68, %69 : vector<32x128xf32>
    %cst_9 = arith.constant 0.000000e+00 : f32
    %71 = vector.broadcast %cst_9 : f32 to vector<32x128xf32>
    %72 = arith.maximumf %70, %71 : vector<32x128xf32>
    %73 = tpu.concatenate %16, %24, %32, %40, %48, %56, %64, %72 in 0 : vector<32x128xf32>, vector<32x128xf32>, vector<32x128xf32>, vector<32x128xf32>, vector<32x128xf32>, vector<32x128xf32>, vector<32x128xf32>, vector<32x128xf32> -> vector<256x128xf32>
    %c0_10 = arith.constant 0 : index
    %c0_11 = arith.constant 0 : index
    %74 = vector.load %arg3[%c0_10, %c0_11] : memref<256x256xbf16, #tpu.memory_space<vmem>>, vector<256x256xbf16>
    %75 = arith.truncf %73 : vector<256x128xf32> to vector<256x128xbf16>
    %cst_12 = arith.constant dense<0.000000e+00> : vector<256x128xf32>
    %76 = tpu.matmul %74, %75, %cst_12 {dimension_numbers = #tpu.dot_dimension_numbers<[1], [0], [0], [1], [0, 0, 1, 1], [], []>} : vector<256x256xbf16>, vector<256x128xbf16>, vector<256x128xf32> -> vector<256x128xf32>
    %77 = vector.extract_strided_slice %76 {offsets = [0, 0], sizes = [32, 128], strides = [1, 1]} : vector<256x128xf32> to vector<32x128xf32>
    %78 = vector.broadcast %4 : vector<32x1xf32> to vector<32x128xf32>
    %79 = arith.addf %77, %78 : vector<32x128xf32>
    %cst_13 = arith.constant 0.000000e+00 : f32
    %80 = vector.broadcast %cst_13 : f32 to vector<32x128xf32>
    %81 = arith.maximumf %79, %80 : vector<32x128xf32>
    %82 = vector.broadcast %5 : vector<32x1xf32> to vector<32x128xf32>
    %83 = arith.mulf %81, %82 : vector<32x128xf32>
    %cst_14 = arith.constant dense<0.000000e+00> : vector<128xf32>
    %84 = vector.multi_reduction <add>, %83, %cst_14 [0] : vector<32x128xf32> to vector<128xf32>
    %85 = vector.shape_cast %84 : vector<128xf32> to vector<1x128xf32>
    %86 = vector.broadcast %6 : vector<32x1xf32> to vector<32x128xf32>
    %87 = arith.mulf %81, %86 : vector<32x128xf32>
    %cst_15 = arith.constant dense<0.000000e+00> : vector<128xf32>
    %88 = vector.multi_reduction <add>, %87, %cst_15 [0] : vector<32x128xf32> to vector<128xf32>
    %89 = vector.shape_cast %88 : vector<128xf32> to vector<1x128xf32>
    %90 = vector.extract_strided_slice %76 {offsets = [32, 0], sizes = [32, 128], strides = [1, 1]} : vector<256x128xf32> to vector<32x128xf32>
    %91 = vector.broadcast %4 : vector<32x1xf32> to vector<32x128xf32>
    %92 = arith.addf %90, %91 : vector<32x128xf32>
    %cst_16 = arith.constant 0.000000e+00 : f32
    %93 = vector.broadcast %cst_16 : f32 to vector<32x128xf32>
    %94 = arith.maximumf %92, %93 : vector<32x128xf32>
    %95 = vector.broadcast %5 : vector<32x1xf32> to vector<32x128xf32>
    %96 = arith.mulf %94, %95 : vector<32x128xf32>
    %cst_17 = arith.constant dense<0.000000e+00> : vector<128xf32>
    %97 = vector.multi_reduction <add>, %96, %cst_17 [0] : vector<32x128xf32> to vector<128xf32>
    %98 = vector.shape_cast %97 : vector<128xf32> to vector<1x128xf32>
    %99 = vector.broadcast %6 : vector<32x1xf32> to vector<32x128xf32>
    %100 = arith.mulf %94, %99 : vector<32x128xf32>
    %cst_18 = arith.constant dense<0.000000e+00> : vector<128xf32>
    %101 = vector.multi_reduction <add>, %100, %cst_18 [0] : vector<32x128xf32> to vector<128xf32>
    %102 = vector.shape_cast %101 : vector<128xf32> to vector<1x128xf32>
    %103 = vector.extract_strided_slice %76 {offsets = [64, 0], sizes = [32, 128], strides = [1, 1]} : vector<256x128xf32> to vector<32x128xf32>
    %104 = vector.broadcast %4 : vector<32x1xf32> to vector<32x128xf32>
    %105 = arith.addf %103, %104 : vector<32x128xf32>
    %cst_19 = arith.constant 0.000000e+00 : f32
    %106 = vector.broadcast %cst_19 : f32 to vector<32x128xf32>
    %107 = arith.maximumf %105, %106 : vector<32x128xf32>
    %108 = vector.broadcast %5 : vector<32x1xf32> to vector<32x128xf32>
    %109 = arith.mulf %107, %108 : vector<32x128xf32>
    %cst_20 = arith.constant dense<0.000000e+00> : vector<128xf32>
    %110 = vector.multi_reduction <add>, %109, %cst_20 [0] : vector<32x128xf32> to vector<128xf32>
    %111 = vector.shape_cast %110 : vector<128xf32> to vector<1x128xf32>
    %112 = vector.broadcast %6 : vector<32x1xf32> to vector<32x128xf32>
    %113 = arith.mulf %107, %112 : vector<32x128xf32>
    %cst_21 = arith.constant dense<0.000000e+00> : vector<128xf32>
    %114 = vector.multi_reduction <add>, %113, %cst_21 [0] : vector<32x128xf32> to vector<128xf32>
    %115 = vector.shape_cast %114 : vector<128xf32> to vector<1x128xf32>
    %116 = vector.extract_strided_slice %76 {offsets = [96, 0], sizes = [32, 128], strides = [1, 1]} : vector<256x128xf32> to vector<32x128xf32>
    %117 = vector.broadcast %4 : vector<32x1xf32> to vector<32x128xf32>
    %118 = arith.addf %116, %117 : vector<32x128xf32>
    %cst_22 = arith.constant 0.000000e+00 : f32
    %119 = vector.broadcast %cst_22 : f32 to vector<32x128xf32>
    %120 = arith.maximumf %118, %119 : vector<32x128xf32>
    %121 = vector.broadcast %5 : vector<32x1xf32> to vector<32x128xf32>
    %122 = arith.mulf %120, %121 : vector<32x128xf32>
    %cst_23 = arith.constant dense<0.000000e+00> : vector<128xf32>
    %123 = vector.multi_reduction <add>, %122, %cst_23 [0] : vector<32x128xf32> to vector<128xf32>
    %124 = vector.shape_cast %123 : vector<128xf32> to vector<1x128xf32>
    %125 = vector.broadcast %6 : vector<32x1xf32> to vector<32x128xf32>
    %126 = arith.mulf %120, %125 : vector<32x128xf32>
    %cst_24 = arith.constant dense<0.000000e+00> : vector<128xf32>
    %127 = vector.multi_reduction <add>, %126, %cst_24 [0] : vector<32x128xf32> to vector<128xf32>
    %128 = vector.shape_cast %127 : vector<128xf32> to vector<1x128xf32>
    %129 = vector.extract_strided_slice %76 {offsets = [128, 0], sizes = [32, 128], strides = [1, 1]} : vector<256x128xf32> to vector<32x128xf32>
    %130 = vector.broadcast %4 : vector<32x1xf32> to vector<32x128xf32>
    %131 = arith.addf %129, %130 : vector<32x128xf32>
    %cst_25 = arith.constant 0.000000e+00 : f32
    %132 = vector.broadcast %cst_25 : f32 to vector<32x128xf32>
    %133 = arith.maximumf %131, %132 : vector<32x128xf32>
    %134 = vector.broadcast %5 : vector<32x1xf32> to vector<32x128xf32>
    %135 = arith.mulf %133, %134 : vector<32x128xf32>
    %cst_26 = arith.constant dense<0.000000e+00> : vector<128xf32>
    %136 = vector.multi_reduction <add>, %135, %cst_26 [0] : vector<32x128xf32> to vector<128xf32>
    %137 = vector.shape_cast %136 : vector<128xf32> to vector<1x128xf32>
    %138 = vector.broadcast %6 : vector<32x1xf32> to vector<32x128xf32>
    %139 = arith.mulf %133, %138 : vector<32x128xf32>
    %cst_27 = arith.constant dense<0.000000e+00> : vector<128xf32>
    %140 = vector.multi_reduction <add>, %139, %cst_27 [0] : vector<32x128xf32> to vector<128xf32>
    %141 = vector.shape_cast %140 : vector<128xf32> to vector<1x128xf32>
    %142 = vector.extract_strided_slice %76 {offsets = [160, 0], sizes = [32, 128], strides = [1, 1]} : vector<256x128xf32> to vector<32x128xf32>
    %143 = vector.broadcast %4 : vector<32x1xf32> to vector<32x128xf32>
    %144 = arith.addf %142, %143 : vector<32x128xf32>
    %cst_28 = arith.constant 0.000000e+00 : f32
    %145 = vector.broadcast %cst_28 : f32 to vector<32x128xf32>
    %146 = arith.maximumf %144, %145 : vector<32x128xf32>
    %147 = vector.broadcast %5 : vector<32x1xf32> to vector<32x128xf32>
    %148 = arith.mulf %146, %147 : vector<32x128xf32>
    %cst_29 = arith.constant dense<0.000000e+00> : vector<128xf32>
    %149 = vector.multi_reduction <add>, %148, %cst_29 [0] : vector<32x128xf32> to vector<128xf32>
    %150 = vector.shape_cast %149 : vector<128xf32> to vector<1x128xf32>
    %151 = vector.broadcast %6 : vector<32x1xf32> to vector<32x128xf32>
    %152 = arith.mulf %146, %151 : vector<32x128xf32>
    %cst_30 = arith.constant dense<0.000000e+00> : vector<128xf32>
    %153 = vector.multi_reduction <add>, %152, %cst_30 [0] : vector<32x128xf32> to vector<128xf32>
    %154 = vector.shape_cast %153 : vector<128xf32> to vector<1x128xf32>
    %155 = vector.extract_strided_slice %76 {offsets = [192, 0], sizes = [32, 128], strides = [1, 1]} : vector<256x128xf32> to vector<32x128xf32>
    %156 = vector.broadcast %4 : vector<32x1xf32> to vector<32x128xf32>
    %157 = arith.addf %155, %156 : vector<32x128xf32>
    %cst_31 = arith.constant 0.000000e+00 : f32
    %158 = vector.broadcast %cst_31 : f32 to vector<32x128xf32>
    %159 = arith.maximumf %157, %158 : vector<32x128xf32>
    %160 = vector.broadcast %5 : vector<32x1xf32> to vector<32x128xf32>
    %161 = arith.mulf %159, %160 : vector<32x128xf32>
    %cst_32 = arith.constant dense<0.000000e+00> : vector<128xf32>
    %162 = vector.multi_reduction <add>, %161, %cst_32 [0] : vector<32x128xf32> to vector<128xf32>
    %163 = vector.shape_cast %162 : vector<128xf32> to vector<1x128xf32>
    %164 = vector.broadcast %6 : vector<32x1xf32> to vector<32x128xf32>
    %165 = arith.mulf %159, %164 : vector<32x128xf32>
    %cst_33 = arith.constant dense<0.000000e+00> : vector<128xf32>
    %166 = vector.multi_reduction <add>, %165, %cst_33 [0] : vector<32x128xf32> to vector<128xf32>
    %167 = vector.shape_cast %166 : vector<128xf32> to vector<1x128xf32>
    %168 = vector.extract_strided_slice %76 {offsets = [224, 0], sizes = [32, 128], strides = [1, 1]} : vector<256x128xf32> to vector<32x128xf32>
    %169 = vector.broadcast %4 : vector<32x1xf32> to vector<32x128xf32>
    %170 = arith.addf %168, %169 : vector<32x128xf32>
    %cst_34 = arith.constant 0.000000e+00 : f32
    %171 = vector.broadcast %cst_34 : f32 to vector<32x128xf32>
    %172 = arith.maximumf %170, %171 : vector<32x128xf32>
    %173 = vector.broadcast %5 : vector<32x1xf32> to vector<32x128xf32>
    %174 = arith.mulf %172, %173 : vector<32x128xf32>
    %cst_35 = arith.constant dense<0.000000e+00> : vector<128xf32>
    %175 = vector.multi_reduction <add>, %174, %cst_35 [0] : vector<32x128xf32> to vector<128xf32>
    %176 = vector.shape_cast %175 : vector<128xf32> to vector<1x128xf32>
    %177 = vector.broadcast %6 : vector<32x1xf32> to vector<32x128xf32>
    %178 = arith.mulf %172, %177 : vector<32x128xf32>
    %cst_36 = arith.constant dense<0.000000e+00> : vector<128xf32>
    %179 = vector.multi_reduction <add>, %178, %cst_36 [0] : vector<32x128xf32> to vector<128xf32>
    %180 = vector.shape_cast %179 : vector<128xf32> to vector<1x128xf32>
    %181 = tpu.concatenate %85, %98, %111, %124, %137, %150, %163, %176 in 0 : vector<1x128xf32>, vector<1x128xf32>, vector<1x128xf32>, vector<1x128xf32>, vector<1x128xf32>, vector<1x128xf32>, vector<1x128xf32>, vector<1x128xf32> -> vector<8x128xf32>
    %182 = vector.broadcast %7 : vector<1x1xf32> to vector<8x128xf32>
    %183 = arith.addf %181, %182 : vector<8x128xf32>
    %184 = tpu.concatenate %89, %102, %115, %128, %141, %154, %167, %180 in 0 : vector<1x128xf32>, vector<1x128xf32>, vector<1x128xf32>, vector<1x128xf32>, vector<1x128xf32>, vector<1x128xf32>, vector<1x128xf32>, vector<1x128xf32> -> vector<8x128xf32>
    %185 = vector.broadcast %8 : vector<1x1xf32> to vector<8x128xf32>
    %186 = arith.addf %184, %185 : vector<8x128xf32>
    %c0_37 = arith.constant 0 : index
    %c0_38 = arith.constant 0 : index
    %c0_39 = arith.constant 0 : index
    %187 = vector.load %arg4[%c0_37, %c0_38, %c0_39] : memref<2x8x128xf32, #tpu.memory_space<vmem>>, vector<1x8x128xf32>
    %188 = vector.shape_cast %187 : vector<1x8x128xf32> to vector<8x128xf32>
    %189 = vector.shape_cast %183 : vector<8x128xf32> to vector<1x8x128xf32>
    tpu.vector_store %arg4[%c0_37, %c0_38, %c0_39], %189 {strides = array<i32>} : memref<2x8x128xf32, #tpu.memory_space<vmem>>, vector<1x8x128xf32>,
    %c1 = arith.constant 1 : index
    %c0_40 = arith.constant 0 : index
    %c0_41 = arith.constant 0 : index
    %190 = vector.load %arg4[%c1, %c0_40, %c0_41] : memref<2x8x128xf32, #tpu.memory_space<vmem>>, vector<1x8x128xf32>
    %191 = vector.shape_cast %190 : vector<1x8x128xf32> to vector<8x128xf32>
    %192 = vector.shape_cast %186 : vector<8x128xf32> to vector<1x8x128xf32>
    tpu.vector_store %arg4[%c1, %c0_40, %c0_41], %192 {strides = array<i32>} : memref<2x8x128xf32, #tpu.memory_space<vmem>>, vector<1x8x128xf32>,
    return
  }
  func.func @transform_0(%arg0: i32) -> (i32, i32) {
    %c0_i32 = arith.constant 0 : i32
    %c0_i32_0 = arith.constant 0 : i32
    return %c0_i32, %arg0 : i32, i32
  }
  func.func @transform_1(%arg0: i32) -> (i32, i32) {
    %c0_i32 = arith.constant 0 : i32
    %c0_i32_0 = arith.constant 0 : i32
    %c0_i32_1 = arith.constant 0 : i32
    return %c0_i32, %c0_i32_0 : i32, i32
  }
  func.func @transform_2(%arg0: i32) -> (i32, i32) {
    %c0_i32 = arith.constant 0 : i32
    %c0_i32_0 = arith.constant 0 : i32
    %c0_i32_1 = arith.constant 0 : i32
    return %c0_i32, %c0_i32_0 : i32, i32
  }
  func.func @transform_3(%arg0: i32) -> (i32, i32, i32) {
    %c0_i32 = arith.constant 0 : i32
    %c0_i32_0 = arith.constant 0 : i32
    %c0_i32_1 = arith.constant 0 : i32
    return %c0_i32, %c0_i32_0, %arg0 : i32, i32, i32
  }
}

</mosaic_0001>

<bundles_post_ra>
// kernel: tpu_custom_call.1
= control target key start
LH: loop header
LB: loop body
LE: loop exit
PB: predicated region body
PF: predicated region fallthrough
CT: control target
= control target key end

     0   :  { %8 = vsyncpa [#allocation3], 0  ;;  %s1558_s0 = inlined_call_operand.vmem [shape: f32[8,128], index: 0, kind: input, shape index: {}]   ;;  %s1559_s1 = inlined_call_operand.vmem [shape: f32[32,6], index: 1, kind: input, shape index: {}]   ;;  %s1560_s2 = inlined_call_operand.hbm [shape: bf16[256,256], index: 2, kind: input, shape index: {}]   ;;  %s1561_s3 = inlined_call_operand.hbm [shape: f32[2,8,128], index: 3, kind: output, shape index: {}]  }
   0x1   :  { %9 = vsyncpa [#allocation4], 0  ;;  %s18_s14 = sshll.u32 %s1560_s2, 4  ;;  %s1191_s15 = smov [#allocation2]   ;;  %s19_s14 = int_to_ptr.hbm [resolvable:$true] %s18_s14 }
   0x2   :  { %s20_s16 = sshll.u32 %s1191_s15, 4  ;;  %s1192_s17 = smov 128   ;;  %s21_s16 = int_to_ptr.vmem [resolvable:$true] %s20_s16 }
   0x3   :  { %s1193_s18 = smov 8  }
   0x4   :  { %26 = dma.hbm_to_vmem [thread:$0]  %s19_s14, 4096, %s21_s16, [#allocation3], %s1192_s17, %s1192_s17, %s1193_s18  }
   0x5   :  { %1187 = dma.done.wait [#allocation3], 4096  }
   0x6   :  { %1188 = vsyncadd [#allocation3], 4294963200  ;;  %v1194_v0 = vmov 1   ;;  %v1195_v1 = vmov 0   ;;  %v1230_v2 = vld [vmem:[%s1559_s1 + $0x10] sm:$0xff]  ;;  %v1237_v3 = vld [vmem:[%s1559_s1] sm:$0xff] }
   0x7   :  { %1129 = vset.pattern.permute.xlu1 %v1194_v0  ;;  %1128 = vset.pattern.permute.xlu0 %v1195_v1  ;;  %v1243_v4 = vld [vmem:[%s1559_s1 + $0x18] sm:$0xff]  ;;  %v1250_v5 = vld [vmem:[%s1559_s1 + $0x8] sm:$0xff]  ;;  %s1196_s26 = smov 123   ;;  %v1260_v6 = vld [vmem:[%s1558_s0] sm:$0xff]  ;;  %v909_v46 = vrot.slane %v1237_v3, 1  ;;  %vm882_vm0 = vcmask 1040384  }
   0x8   :  { %1130 = vset.pattern.permute.xlu2 %v1195_v1  ;;  %70 = vperm.xlu1 %1129, %v1230_v2   ;;  %v111_v9 = vperm.slane %v1260_v6, 3  ;;  %v163_v11 = vperm.slane %v1260_v6, 7  ;;  %v98_v23 = vperm.slane %v1260_v6, 2  ;;  %v150_v25 = vperm.slane %v1260_v6, 6  ;;  %s1200_s29 = smov [#allocation5]   ;;  %s925_s6 = sshll.u32 %s1561_s3, 4  ;;  %s926_s6 = int_to_ptr.hbm [resolvable:$true] %s925_s6 }
   0x9   :  { %48 = vperm.xlu0 %1128, %v1230_v2   ;;  %38 = vperm.xlu2 %1130, %v1237_v3   ;;  %v1289_v31 = vperm.slane %v1260_v6, 1  ;;  %v1292_v32 = vperm.slane %v1260_v6, 5  ;;  %v1312_v50 = vperm.slane %v1260_v6, 0  ;;  %vm884_vm1 = vcmask 1041408   ;;  %s923_s30 = sshll.u32 %s1200_s29, 4  ;;  %s924_s30 = int_to_ptr.vmem [resolvable:$true] %s923_s30 }
   0xa   :  { %vm886_vm2 = vcmask 1042432   ;;  %vm888_vm3 = vcmask 1043456   ;;  %vm890_vm4 = vcmask 1044480   ;;  %vm892_vm5 = vcmask 1045504  }
   0xb   :  { %vm894_vm6 = vcmask 1046528  }
  0x10   :  { %74 = vperm.xlu1 %1129, %v1243_v4  }
  0x11   :  { %53 = vperm.xlu0 %1128, %v1243_v4   ;;  %43 = vperm.xlu2 %1130, %v1250_v5  }
  0x18   :  { %66 = vperm.xlu1 %1129, %v1250_v5  }
  0x19   :  { %1131 = vset.pattern.permute.xlu0 %v1194_v0  ;;  %896 = vrot.lane.b32.xlu2 %v1237_v3, %s1196_s26 }
  0x1a   :  { %62 = vperm.xlu0 %1131, %v1237_v3  }
  0x20   :  { %910 = vrot.lane.b32.xlu1 %v909_v46, %s1196_s26 }
  0x63   :  { %v1267_v10 = vpop.permute.xlu2 %38 }
  0x64   :  { %v112_v38 = vmul.f32 %v111_v9, %v1267_v10  ;;  %v164_v39 = vmul.f32 %v163_v11, %v1267_v10  ;;  %v99_v49 = vmul.f32 %v98_v23, %v1267_v10  ;;  %v151_v54 = vmul.f32 %v150_v25, %v1267_v10 }
  0x6b   :  { %v1280_v20 = vpop.permute.xlu2 %43 }
  0x6c   :  { %v113_v30 = vmul.f32 %v111_v9, %v1280_v20  ;;  %v165_v35 = vmul.f32 %v163_v11, %v1280_v20  ;;  %v100_v58 = vmul.f32 %v98_v23, %v1280_v20  ;;  %v152_v61 = vmul.f32 %v150_v25, %v1280_v20 }
  0x7a   :  { %v1262_v7 = vpop.permute.xlu1 %70 }
  0x7b   :  { %v1264_v8 = vpop.permute.xlu0 %48 }
  0x7c   :  { %v114_v12 = vmul.f32 %v111_v9, %v1264_v8  ;;  %v166_v13 = vmul.f32 %v163_v11, %v1264_v8  ;;  %v101_v40 = vmul.f32 %v98_v23, %v1264_v8  ;;  %v153_v41 = vmul.f32 %v150_v25, %v1264_v8 }
  0x7e   :  { %v118_v16 = vadd.f32 %v114_v12, %v1262_v7  ;;  %v170_v19 = vadd.f32 %v166_v13, %v1262_v7  ;;  %v105_v57 = vadd.f32 %v101_v40, %v1262_v7  ;;  %v157_v60 = vadd.f32 %v153_v41, %v1262_v7 }
  0x80   :  { %v122_v24 = vmax.f32 %v118_v16, 0.0  ;;  %v174_v27 = vmax.f32 %v170_v19, 0.0  ;;  %v1332_v19 = vperm.slane %v1260_v6, 4 }
  0x82   :  { %v1272_v14 = vpop.permute.xlu1 %74 }
  0x83   :  { %v1274_v15 = vpop.permute.xlu0 %53 }
  0x84   :  { %v115_v17 = vmul.f32 %v111_v9, %v1274_v15  ;;  %v167_v18 = vmul.f32 %v163_v11, %v1274_v15  ;;  %v102_v29 = vmul.f32 %v98_v23, %v1274_v15  ;;  %v154_v36 = vmul.f32 %v150_v25, %v1274_v15 }
  0x85   :  { %v89_v62 = vmul.f32 %v1289_v31, %v1274_v15  ;;  %v141_v16 = vmul.f32 %v1292_v32, %v1274_v15  ;;  %v86_v23 = vmul.f32 %v1289_v31, %v1267_v10  ;;  %v60_v40 = vmul.f32 %v1312_v50, %v1274_v15 }
  0x86   :  { %v119_v21 = vadd.f32 %v115_v17, %v1272_v14  ;;  %v171_v22 = vadd.f32 %v167_v18, %v1272_v14  ;;  %v106_v45 = vadd.f32 %v102_v29, %v1272_v14  ;;  %v158_v53 = vadd.f32 %v154_v36, %v1272_v14 }
  0x87   :  { %v109_v17 = vmax.f32 %v105_v57, 0.0  ;;  %v88_v18 = vmul.f32 %v1289_v31, %v1264_v8  ;;  %v1197_v29 = vmov 2   ;;  %v87_v36 = vmul.f32 %v1289_v31, %v1280_v20 }
  0x88   :  { %v123_v26 = vmax.f32 %v119_v21, 0.0  ;;  %v175_v28 = vmax.f32 %v171_v22, 0.0  ;;  %v110_v59 = vmax.f32 %v106_v45, 0.0  ;;  %v162_v11 = vmax.f32 %v158_v53, 0.0  ;;  %1134 = vset.pattern.permute.xlu1 %v1197_v29  ;;  %1133 = vset.pattern.permute.xlu0 %v1197_v29 }
  0x89   :  { %v161_v21 = vmax.f32 %v157_v60, 0.0  ;;  %v140_v22 = vmul.f32 %v1292_v32, %v1264_v8  ;;  %571 = vperm.xlu1 %1134, %v1230_v2   ;;  %567 = vperm.xlu0 %1133, %v1250_v5   ;;  %v128_v41 = vmul.f32 %v1332_v19, %v1274_v15  ;;  %v59_v15 = vmul.f32 %v1312_v50, %v1264_v8 }
  0x8a   :  { %v215_v33 = vpack.c.bf16 %v123_v26, %v122_v24  ;;  %v223_v34 = vpack.c.bf16 %v175_v28, %v174_v27  ;;  %v1296_v37 = vpop.permute.xlu1 %66  ;;  %v138_v24 = vmul.f32 %v1292_v32, %v1267_v10  ;;  %v213_v25 = vpack.c.bf16 %v110_v59, %v109_v17  ;;  %1132 = vset.pattern.permute.xlu2 %v1197_v29  ;;  %v1082_v29 = vld [vmem:[#allocation2 + $0x84] sm:$0xf] }
  0x8b   :  { %v117_v43 = vadd.f32 %v113_v30, %v1296_v37  ;;  %v169_v44 = vadd.f32 %v165_v35, %v1296_v37  ;;  %v104_v9 = vadd.f32 %v100_v58, %v1296_v37  ;;  %v156_v13 = vadd.f32 %v152_v61, %v1296_v37  ;;  %563 = vperm.xlu2 %1132, %v1237_v3  }
  0x8c   :  { %v1302_v42 = vpop.permute.xlu0 %62  ;;  %384 = vmatpush.bf16.msra.mxu0 %v215_v33  ;;  %1098 = vmatpush.bf16.msra.mxu2 %v215_v33  ;;  %v93_v28 = vadd.f32 %v89_v62, %v1272_v14  ;;  %v221_v6 = vpack.c.bf16 %v162_v11, %v161_v21  ;;  %v92_v35 = vadd.f32 %v88_v18, %v1262_v7  ;;  %v1198_v61 = vmov 3  }
  0x8d   :  { %473 = vmatpush.bf16.msra.mxu1 %v223_v34  ;;  %1106 = vmatpush.bf16.msra.mxu3 %v223_v34  ;;  %v116_v47 = vadd.f32 %v112_v38, %v1302_v42  ;;  %v168_v48 = vadd.f32 %v164_v39, %v1302_v42  ;;  %v121_v51 = vmax.f32 %v117_v43, 0.0  ;;  %v173_v52 = vmax.f32 %v169_v44, 0.0 }
  0x8e   :  { %v103_v1 = vadd.f32 %v99_v49, %v1302_v42  ;;  %v155_v12 = vadd.f32 %v151_v54, %v1302_v42  ;;  %v108_v27 = vmax.f32 %v104_v9, 0.0  ;;  %v160_v33 = vmax.f32 %v156_v13, 0.0 }
  0x8f   :  { %v120_v55 = vmax.f32 %v116_v47, 0.0  ;;  %v172_v56 = vmax.f32 %v168_v48, 0.0  ;;  %v145_v34 = vadd.f32 %v141_v16, %v1272_v14  ;;  %v139_v38 = vmul.f32 %v1292_v32, %v1280_v20 }
  0x90   :  { %v107_v26 = vmax.f32 %v103_v1, 0.0  ;;  %v159_v30 = vmax.f32 %v155_v12, 0.0  ;;  %v144_v39 = vadd.f32 %v140_v22, %v1262_v7  ;;  %v97_v44 = vmax.f32 %v93_v28, 0.0  ;;  %v942_v28 = vld [vmem:[#allocation2 + $0x8] sm:$0xf0] }
  0x91   :  { %v214_v63 = vpack.c.bf16 %v121_v51, %v120_v55  ;;  %v222_v0 = vpack.c.bf16 %v173_v52, %v172_v56  ;;  %v90_v45 = vadd.f32 %v86_v23, %v1302_v42  ;;  %v91_v46 = vadd.f32 %v87_v36, %v1296_v37  ;;  %1135 = vset.pattern.permute.xlu1 %v1198_v61 }
  0x92   :  { %v212_v43 = vpack.c.bf16 %v108_v27, %v107_v26  ;;  %v220_v31 = vpack.c.bf16 %v160_v33, %v159_v30  ;;  %v149_v47 = vmax.f32 %v145_v34, 0.0  ;;  %v142_v32 = vadd.f32 %v138_v24, %v1302_v42  ;;  %587 = vperm.xlu1 %1135, %v1237_v3   ;;  %v940_v26 = vld [vmem:[#allocation2] sm:$0xf]  ;;  %v1066_v27 = vld [vmem:[#allocation2 + $0x4] sm:$0xf] }
  0x93   :  { %385 = vmatpush.bf16.msra.mxu0 %v214_v63  ;;  %1099 = vmatpush.bf16.msra.mxu2 %v214_v63  ;;  %v143_v48 = vadd.f32 %v139_v38, %v1296_v37  ;;  %v96_v49 = vmax.f32 %v92_v35, 0.0  ;;  %v148_v51 = vmax.f32 %v144_v39, 0.0  ;;  %v127_v52 = vmul.f32 %v1332_v19, %v1264_v8  ;;  %v948_v39 = vld [vmem:[#allocation2 + $0x10] sm:$0xf] }
  0x94   :  { %474 = vmatpush.bf16.msra.mxu1 %v222_v0  ;;  %1107 = vmatpush.bf16.msra.mxu3 %v222_v0  ;;  %v94_v54 = vmax.f32 %v90_v45, 0.0  ;;  %v95_v55 = vmax.f32 %v91_v46, 0.0  ;;  %v80_v56 = vadd.f32 %v1272_v14, %v60_v40  ;;  %v146_v58 = vmax.f32 %v142_v32, 0.0  ;;  %v1069_v40 = vld [vmem:[#allocation2 + $0x14] sm:$0xf0] }
  0x95   :  { %v211_v53 = vpack.c.bf16 %v97_v44, %v96_v49  ;;  %v219_v57 = vpack.c.bf16 %v149_v47, %v148_v51  ;;  %v147_v59 = vmax.f32 %v143_v48, 0.0  ;;  %v132_v60 = vadd.f32 %v128_v41, %v1272_v14  ;;  %575 = vperm.xlu2 %1132, %v1243_v4   ;;  %v1012_v41 = vld [vmem:[#allocation2 + $0x90] sm:$0xf]  ;;  %v1068_v44 = vld [vmem:[#allocation2 + $0x14] sm:$0xf] }
  0x96   :  { %v79_v62 = vadd.f32 %v1262_v7, %v59_v15  ;;  %v57_v63 = vmul.f32 %v1312_v50, %v1267_v10  ;;  %v58_v8 = vmul.f32 %v1312_v50, %v1280_v20  ;;  %v131_v0 = vadd.f32 %v127_v52, %v1262_v7  ;;  %v950_v45 = vld [vmem:[#allocation2 + $0x18] sm:$0xf0]  ;;  %v1084_v46 = vld [vmem:[#allocation2 + $0x94] sm:$0xf]  ;;  %v1071_v15 = vld [vmem:[#allocation2 + $0x24] sm:$0xf0] }
  0x97   :  { %386 = vmatpush.bf16.msra.mxu0 %v213_v25  ;;  %1100 = vmatpush.bf16.msra.mxu2 %v213_v25  ;;  %v125_v1 = vmul.f32 %v1332_v19, %v1267_v10  ;;  %v126_v14 = vmul.f32 %v1332_v19, %v1280_v20  ;;  %v210_v9 = vpack.c.bf16 %v95_v55, %v94_v54  ;;  %v84_v11 = vmax.f32 %v80_v56, 0.0  ;;  %v1020_v51 = vld [vmem:[#allocation2 + $0xa0] sm:$0xf]  ;;  %v1087_v52 = vld [vmem:[#allocation2 + $0xa4] sm:$0xf0] }
  0x98   :  { %475 = vmatpush.bf16.msra.mxu1 %v221_v6  ;;  %1108 = vmatpush.bf16.msra.mxu3 %v221_v6  ;;  %v77_v12 = vadd.f32 %v1302_v42, %v57_v63  ;;  %v78_v13 = vadd.f32 %v1296_v37, %v58_v8  ;;  %v1199_v16 = vmov 4   ;;  %v218_v50 = vpack.c.bf16 %v147_v59, %v146_v58  ;;  %v1006_v6 = vld [vmem:[#allocation2 + $0x88] sm:$0xf0]  ;;  %v1086_v55 = vld [vmem:[#allocation2 + $0xa4] sm:$0xf] }
  0x99   :  { %1137 = vset.pattern.permute.xlu0 %v1199_v16  ;;  %v136_v17 = vmax.f32 %v132_v60, 0.0  ;;  %v129_v7 = vadd.f32 %v125_v1, %v1302_v42  ;;  %v130_v18 = vadd.f32 %v126_v14, %v1296_v37  ;;  %v83_v10 = vmax.f32 %v79_v62, 0.0  ;;  %v1067_v42 = vld [vmem:[#allocation2 + $0x4] sm:$0xf0]  ;;  %v1004_v37 = vld [vmem:[#allocation2 + $0x80] sm:$0xf] }
  0x9a   :  { %616 = vperm.xlu0 %1137, %v1237_v3   ;;  %v135_v20 = vmax.f32 %v131_v0, 0.0  ;;  %v81_v21 = vmax.f32 %v77_v12, 0.0  ;;  %v82_v22 = vmax.f32 %v78_v13, 0.0  ;;  %v1083_v3 = vld [vmem:[#allocation2 + $0x84] sm:$0xf0]  ;;  %1138 = vset.pattern.permute.xlu1 %v1199_v16  ;;  %v941_v34 = vor.u32 %v1067_v42, %v940_v26 }
  0x9b   :  { %387 = vmatpush.bf16.msra.mxu0 %v212_v43  ;;  %1101 = vmatpush.bf16.msra.mxu2 %v212_v43  ;;  %v209_v19 = vpack.c.bf16 %v84_v11, %v83_v10  ;;  %v133_v24 = vmax.f32 %v129_v7, 0.0  ;;  %v134_v25 = vmax.f32 %v130_v18, 0.0  ;;  %v1005_v35 = vor.u32 %v1083_v3, %v1004_v37  ;;  %v1085_v43 = vld [vmem:[#allocation2 + $0x94] sm:$0xf0]  ;;  %v958_v54 = vld [vmem:[#allocation2 + $0x28] sm:$0xf0] }
  0x9c   :  { %476 = vmatpush.bf16.msra.mxu1 %v220_v31  ;;  %1109 = vmatpush.bf16.msra.mxu3 %v220_v31  ;;  %v217_v23 = vpack.c.bf16 %v136_v17, %v135_v20  ;;  %v208_v30 = vpack.c.bf16 %v82_v22, %v81_v21  ;;  %v945_v36 = vor.u32 %v1066_v27, %v942_v28  ;;  %v1014_v31 = vld [vmem:[#allocation2 + $0x98] sm:$0xf0]  ;;  %v1022_v56 = vld [vmem:[#allocation2 + $0xa8] sm:$0xf0]  ;;  %v964_v60 = vld [vmem:[#allocation2 + $0x30] sm:$0xf] }
  0x9d   :  { %v216_v33 = vpack.c.bf16 %v134_v25, %v133_v24  ;;  %620 = vperm.xlu1 %1138, %v1250_v5   ;;  %v1009_v38 = vor.u32 %v1082_v29, %v1006_v6  ;;  %1136 = vset.pattern.permute.xlu2 %v1198_v61  ;;  %v949_v47 = vor.u32 %v1069_v40, %v948_v39  ;;  %v1073_v61 = vld [vmem:[#allocation2 + $0x34] sm:$0xf0]  ;;  %v1028_v62 = vld [vmem:[#allocation2 + $0xb0] sm:$0xf]  ;;  %v1072_v63 = vld [vmem:[#allocation2 + $0x34] sm:$0xf] }
  0x9e   :  { %591 = vperm.xlu2 %1136, %v1250_v5   ;;  %v1013_v32 = vor.u32 %v1085_v43, %v1012_v41  ;;  %v953_v48 = vor.u32 %v1068_v44, %v950_v45  ;;  %v1017_v49 = vor.u32 %v1084_v46, %v1014_v31  ;;  %v956_v5 = vld [vmem:[#allocation2 + $0x20] sm:$0xf]  ;;  %v1025_v59 = vor.u32 %v1086_v55, %v1022_v56  ;;  %v966_v8 = vld [vmem:[#allocation2 + $0x38] sm:$0xf0]  ;;  %v1088_v0 = vld [vmem:[#allocation2 + $0xb4] sm:$0xf] }
  0x9f   :  { %388 = vmatpush.bf16.msra.mxu0 %v211_v53  ;;  %1102 = vmatpush.bf16.msra.mxu2 %v211_v53  ;;  %v1070_v53 = vld [vmem:[#allocation2 + $0x24] sm:$0xf]  ;;  %v1030_v1 = vld [vmem:[#allocation2 + $0xb8] sm:$0xf0]  ;;  %v965_v14 = vor.u32 %v1073_v61, %v964_v60  ;;  %v969_v11 = vor.u32 %v1072_v63, %v966_v8  ;;  %v972_v13 = vld [vmem:[#allocation2 + $0x40] sm:$0xf] }
  0xa0   :  { %477 = vmatpush.bf16.msra.mxu1 %v219_v57  ;;  %1110 = vmatpush.bf16.msra.mxu3 %v219_v57  ;;  %v957_v57 = vor.u32 %v1071_v15, %v956_v5  ;;  %v961_v58 = vor.u32 %v1070_v53, %v958_v54  ;;  %v1033_v12 = vor.u32 %v1088_v0, %v1030_v1  ;;  %v1075_v16 = vld [vmem:[#allocation2 + $0x44] sm:$0xf0]  ;;  %v1074_v7 = vld [vmem:[#allocation2 + $0x44] sm:$0xf]  ;;  %v974_v18 = vld [vmem:[#allocation2 + $0x48] sm:$0xf0] }
  0xa1   :  { %v1091_v17 = vld [vmem:[#allocation2 + $0xc4] sm:$0xf0]  ;;  %v1090_v10 = vld [vmem:[#allocation2 + $0xc4] sm:$0xf]  ;;  %v1038_v20 = vld [vmem:[#allocation2 + $0xc8] sm:$0xf0]  ;;  %v977_v22 = vor.u32 %v1074_v7, %v974_v18 }
  0xa2   :  { %628 = vperm.xlu0 %1137, %v1243_v4   ;;  %v980_v24 = vld [vmem:[#allocation2 + $0x50] sm:$0xf]  ;;  %v1077_v25 = vld [vmem:[#allocation2 + $0x54] sm:$0xf0]  ;;  %v1076_v37 = vld [vmem:[#allocation2 + $0x54] sm:$0xf] }
  0xa3   :  { %389 = vmatpush.bf16.msra.mxu0 %v210_v9  ;;  %1103 = vmatpush.bf16.msra.mxu2 %v210_v9  ;;  %v1044_v26 = vld [vmem:[#allocation2 + $0xd0] sm:$0xf]  ;;  %v1093_v42 = vld [vmem:[#allocation2 + $0xd4] sm:$0xf0]  ;;  %v982_v3 = vld [vmem:[#allocation2 + $0x58] sm:$0xf0]  ;;  %v981_v29 = vor.u32 %v1077_v25, %v980_v24 }
  0xa4   :  { %478 = vmatpush.bf16.msra.mxu1 %v218_v50  ;;  %1111 = vmatpush.bf16.msra.mxu3 %v218_v50  ;;  %v1036_v50 = vld [vmem:[#allocation2 + $0xc0] sm:$0xf]  ;;  %v1092_v27 = vld [vmem:[#allocation2 + $0xd4] sm:$0xf]  ;;  %v1046_v28 = vld [vmem:[#allocation2 + $0xd8] sm:$0xf0]  ;;  %v1045_v6 = vor.u32 %v1093_v42, %v1044_v26 }
  0xa5   :  { %624 = vperm.xlu1 %1138, %v1230_v2   ;;  %v1037_v21 = vor.u32 %v1091_v17, %v1036_v50  ;;  %v1052_v39 = vld [vmem:[#allocation2 + $0xe0] sm:$0xf]  ;;  %v1095_v40 = vld [vmem:[#allocation2 + $0xe4] sm:$0xf0]  ;;  %v1078_v41 = vld [vmem:[#allocation2 + $0x64] sm:$0xf] }
  0xa6   :  { %595 = vperm.xlu2 %1136, %v1230_v2   ;;  %v1021_v2 = vor.u32 %v1087_v52, %v1020_v51  ;;  %v990_v43 = vld [vmem:[#allocation2 + $0x68] sm:$0xf0]  ;;  %v1094_v44 = vld [vmem:[#allocation2 + $0xe4] sm:$0xf]  ;;  %v1053_v31 = vor.u32 %v1095_v40, %v1052_v39  ;;  %v1060_v5 = vld [vmem:[#allocation2 + $0xf0] sm:$0xf] }
  0xa7   :  { %390 = vmatpush.bf16.msra.mxu0 %v209_v19  ;;  %1104 = vmatpush.bf16.msra.mxu2 %v209_v19  ;;  %v973_v19 = vor.u32 %v1075_v16, %v972_v13  ;;  %v1054_v45 = vld [vmem:[#allocation2 + $0xe8] sm:$0xf0]  ;;  %v1097_v15 = vld [vmem:[#allocation2 + $0xf4] sm:$0xf0]  ;;  %v1080_v51 = vld [vmem:[#allocation2 + $0x74] sm:$0xf] }
  0xa8   :  { %479 = vmatpush.bf16.msra.mxu1 %v217_v23  ;;  %1112 = vmatpush.bf16.msra.mxu3 %v217_v23  ;;  %v1041_v23 = vor.u32 %v1090_v10, %v1038_v20  ;;  %v998_v52 = vld [vmem:[#allocation2 + $0x78] sm:$0xf0]  ;;  %v1096_v53 = vld [vmem:[#allocation2 + $0xf4] sm:$0xf]  ;;  %v1061_v56 = vor.u32 %v1097_v15, %v1060_v5 }
  0xa9   :  { %v1062_v54 = vld [vmem:[#allocation2 + $0xf8] sm:$0xf0] }
  0xab   :  { %391 = vmatpush.bf16.msra.mxu0 %v208_v30  ;;  %1105 = vmatpush.bf16.msra.mxu2 %v208_v30  ;;  %v985_v30 = vor.u32 %v1076_v37, %v982_v3 }
  0xac   :  { %480 = vmatpush.bf16.msra.mxu1 %v216_v33  ;;  %1113 = vmatpush.bf16.msra.mxu3 %v216_v33  ;;  %v1049_v33 = vor.u32 %v1092_v27, %v1046_v28 }
  0xae   :  { %392 = vmatmul.bf16.vlgmr.msra.gmra.mxu0 %v941_v34  ;;  %432 = vmatmul.bf16.vlgmr.msra.gmra.mxu2 %v1005_v35  ;;  %v897_v34 = vpop.permute.xlu2 %896  ;;  %v911_v35 = vpop.permute.xlu1 %910 }
  0xaf   :  { %481 = vmatmul.bf16.vlgmr.msra.gmra.mxu1 %v945_v36  ;;  %521 = vmatmul.bf16.vlgmr.msra.gmra.mxu3 %v1009_v38  ;;  %1114 = vpush %v897_v34  ;;  %v988_v36 = vld [vmem:[#allocation2 + $0x60] sm:$0xf]  ;;  %v1079_v38 = vld [vmem:[#allocation2 + $0x64] sm:$0xf0] }
  0xb0   :  { %599 = vperm.xlu2 %1136, %v1243_v4   ;;  %v1089_v4 = vld [vmem:[#allocation2 + $0xb4] sm:$0xf0]  ;;  %1116 = vpush %v911_v35  ;;  %v989_v46 = vor.u32 %v1079_v38, %v988_v36 }
  0xb1   :  { %v1029_v9 = vor.u32 %v1089_v4, %v1028_v62 }
  0xbe   :  { %397 = vmatmul.bf16.gmra.mxu0 %v949_v47  ;;  %437 = vmatmul.bf16.gmra.mxu2 %v1013_v32  ;;  %v993_v47 = vor.u32 %v1078_v41, %v990_v43  ;;  %v1057_v32 = vor.u32 %v1094_v44, %v1054_v45 }
  0xbf   :  { %486 = vmatmul.bf16.gmra.mxu1 %v953_v48  ;;  %526 = vmatmul.bf16.gmra.mxu3 %v1017_v49  ;;  %v996_v48 = vld [vmem:[#allocation2 + $0x70] sm:$0xf]  ;;  %v1081_v49 = vld [vmem:[#allocation2 + $0x74] sm:$0xf0] }
  0xc0   :  { %v997_v55 = vor.u32 %v1081_v49, %v996_v48 }
  0xce   :  { %402 = vmatmul.bf16.gmra.mxu0 %v957_v57  ;;  %442 = vmatmul.bf16.gmra.mxu2 %v1021_v2  ;;  %v1001_v57 = vor.u32 %v1080_v51, %v998_v52  ;;  %v1065_v2 = vor.u32 %v1096_v53, %v1062_v54 }
  0xcf   :  { %491 = vmatmul.bf16.gmra.mxu1 %v961_v58  ;;  %531 = vmatmul.bf16.gmra.mxu3 %v1025_v59 }
  0xde   :  { %407 = vmatmul.bf16.gmra.mxu0 %v965_v14  ;;  %447 = vmatmul.bf16.gmra.mxu2 %v1029_v9 }
  0xdf   :  { %496 = vmatmul.bf16.gmra.mxu1 %v969_v11  ;;  %536 = vmatmul.bf16.gmra.mxu3 %v1033_v12 }
  0xe0   :  { %s1115_s0 = spop %1114 }
  0xe1   :  { %s1117_s1 = spop %1116 }
  0xe5   :  { %v1388_v58 = vpop.permute.xlu2 %563 }
  0xee   :  { %412 = vmatmul.bf16.gmra.mxu0 %v973_v19  ;;  %452 = vmatmul.bf16.gmra.mxu2 %v1037_v21 }
  0xef   :  { %501 = vmatmul.bf16.gmra.mxu1 %v977_v22  ;;  %541 = vmatmul.bf16.gmra.mxu3 %v1041_v23  ;;  %v1392_v60 = vpop.permute.xlu2 %575 }
  0xf8   :  { %v1399_v13 = vpop.permute.xlu2 %591 }
  0xfb   :  { %v1390_v59 = vpop.permute.xlu1 %571  ;;  %v1396_v8 = vpop.permute.xlu0 %567 }
  0xfe   :  { %417 = vmatmul.bf16.gmra.mxu0 %v981_v29  ;;  %457 = vmatmul.bf16.gmra.mxu2 %v1045_v6 }
  0xff   :  { %506 = vmatmul.bf16.gmra.mxu1 %v985_v30  ;;  %546 = vmatmul.bf16.gmra.mxu3 %v1049_v33 }
 0x100   :  { %v1412_v30 = vpop.permute.xlu2 %595 }
 0x104   :  { %v1394_v4 = vpop.permute.xlu1 %587 }
 0x10c   :  { %v1405_v10 = vpop.permute.xlu0 %616 }
 0x10e   :  { %422 = vmatmul.bf16.gmra.mxu0 %v989_v46  ;;  %462 = vmatmul.bf16.gmra.mxu2 %v1053_v31 }
 0x10f   :  { %511 = vmatmul.bf16.gmra.mxu1 %v993_v47  ;;  %551 = vmatmul.bf16.gmra.mxu3 %v1057_v32  ;;  %v1401_v17 = vpop.permute.xlu1 %620 }
 0x117   :  { %v1416_v36 = vpop.permute.xlu1 %624 }
 0x11e   :  { %427 = vmatmul.bf16.gmra.mxu0 %v997_v55  ;;  %467 = vmatmul.bf16.gmra.mxu2 %v1061_v56  ;;  %v1425_v55 = vpop.permute.xlu0 %628  ;;  %v1427_v56 = vpop.permute.xlu2 %599 }
 0x11f   :  { %516 = vmatmul.bf16.gmra.mxu1 %v1001_v57  ;;  %556 = vmatmul.bf16.gmra.mxu3 %v1065_v2 }
 0x12b   :  { %v393_v61 = vpop.f32.mrf.mxu0 }
 0x12c   :  { %v482_v62 = vpop.f32.mrf.mxu1 }
 0x12d   :  { %v483_v63 = vadd.f32 %v482_v62, %v393_v61 }
 0x12f   :  { %v578_v1 = vadd.f32 %v1388_v58, %v483_v63 }
 0x131   :  { %v433_v0 = vpop.f32.mrf.mxu2  ;;  %v582_v50 = vmax.f32 %v578_v1, 0.0 }
 0x132   :  { %v522_v14 = vpop.f32.mrf.mxu3 }
 0x133   :  { %v523_v9 = vadd.f32 %v522_v14, %v433_v0  ;;  %v395_v11 = vpop.f32.mrf.mxu0  ;;  %v602_v21 = vmul.f32 %v1394_v4, %v582_v50  ;;  %v631_v23 = vmul.f32 %v1405_v10, %v582_v50 }
 0x134   :  { %v484_v12 = vpop.f32.mrf.mxu1 }
 0x135   :  { %v485_v16 = vadd.f32 %v484_v12, %v395_v11  ;;  %v746_v18 = vadd.f32 %v1388_v58, %v523_v9 }
 0x137   :  { %v579_v7 = vadd.f32 %v1396_v8, %v485_v16  ;;  %v750_v37 = vmax.f32 %v746_v18, 0.0 }
 0x139   :  { %v583_v20 = vmax.f32 %v579_v7, 0.0  ;;  %v435_v19 = vpop.f32.mrf.mxu2  ;;  %v754_v35 = vmul.f32 %v750_v37, %v1394_v4  ;;  %v767_v39 = vmul.f32 %v750_v37, %v1405_v10 }
 0x13a   :  { %v524_v22 = vpop.f32.mrf.mxu3 }
 0x13b   :  { %v603_v24 = vmul.f32 %v1399_v13, %v583_v20  ;;  %v632_v25 = vmul.f32 %v1401_v17, %v583_v20  ;;  %v525_v26 = vadd.f32 %v524_v22, %v435_v19  ;;  %v398_v42 = vpop.f32.mrf.mxu0 }
 0x13c   :  { %v487_v3 = vpop.f32.mrf.mxu1 }
 0x13d   :  { %v747_v27 = vadd.f32 %v1396_v8, %v525_v26  ;;  %v488_v28 = vadd.f32 %v487_v3, %v398_v42  ;;  %v635_v29 = vadd.f32 %v632_v25, %v631_v23  ;;  %v606_v6 = vadd.f32 %v603_v24, %v602_v21 }
 0x13f   :  { %v751_v33 = vmax.f32 %v747_v27, 0.0  ;;  %v580_v34 = vadd.f32 %v1390_v59, %v488_v28 }
 0x141   :  { %v755_v38 = vmul.f32 %v751_v33, %v1399_v13  ;;  %v768_v40 = vmul.f32 %v751_v33, %v1401_v17  ;;  %v584_v41 = vmax.f32 %v580_v34, 0.0  ;;  %v438_v43 = vpop.f32.mrf.mxu2 }
 0x142   :  { %v527_v44 = vpop.f32.mrf.mxu3 }
 0x143   :  { %v758_v45 = vadd.f32 %v755_v38, %v754_v35  ;;  %v771_v46 = vadd.f32 %v768_v40, %v767_v39  ;;  %v604_v31 = vmul.f32 %v1412_v30, %v584_v41  ;;  %v633_v47 = vmul.f32 %v1416_v36, %v584_v41  ;;  %v400_v32 = vpop.f32.mrf.mxu0 }
 0x144   :  { %v528_v48 = vadd.f32 %v527_v44, %v438_v43  ;;  %v489_v49 = vpop.f32.mrf.mxu1 }
 0x145   :  { %v636_v5 = vadd.f32 %v635_v29, %v633_v47  ;;  %v490_v15 = vadd.f32 %v489_v49, %v400_v32  ;;  %v607_v51 = vadd.f32 %v606_v6, %v604_v31 }
 0x146   :  { %v748_v52 = vadd.f32 %v1390_v59, %v528_v48 }
 0x147   :  { %v581_v53 = vadd.f32 %v1392_v60, %v490_v15 }
 0x148   :  { %v752_v54 = vmax.f32 %v748_v52, 0.0 }
 0x149   :  { %v585_v57 = vmax.f32 %v581_v53, 0.0  ;;  %v440_v2 = vpop.f32.mrf.mxu2 }
 0x14a   :  { %v756_v61 = vmul.f32 %v752_v54, %v1412_v30  ;;  %v769_v62 = vmul.f32 %v752_v54, %v1416_v36  ;;  %v529_v63 = vpop.f32.mrf.mxu3 }
 0x14b   :  { %v634_v0 = vmul.f32 %v1425_v55, %v585_v57  ;;  %v605_v1 = vmul.f32 %v1427_v56, %v585_v57  ;;  %v530_v14 = vadd.f32 %v529_v63, %v440_v2  ;;  %v403_v9 = vpop.f32.mrf.mxu0 }
 0x14c   :  { %v759_v11 = vadd.f32 %v758_v45, %v756_v61  ;;  %v772_v12 = vadd.f32 %v771_v46, %v769_v62  ;;  %v492_v16 = vpop.f32.mrf.mxu1 }
 0x14d   :  { %v637_v50 = vadd.f32 %v636_v5, %v634_v0  ;;  %v608_v7 = vadd.f32 %v607_v51, %v605_v1  ;;  %v749_v18 = vadd.f32 %v1392_v60, %v530_v14  ;;  %v493_v20 = vadd.f32 %v492_v16, %v403_v9 }
 0x14f   :  { %v753_v19 = vmax.f32 %v749_v18, 0.0  ;;  %v644_v42 = vadd.f32 %v1388_v58, %v493_v20 }
 0x151   :  { %v757_v21 = vmul.f32 %v753_v19, %v1427_v56  ;;  %v770_v22 = vmul.f32 %v753_v19, %v1425_v55  ;;  %v443_v23 = vpop.f32.mrf.mxu2  ;;  %v648_v29 = vmax.f32 %v644_v42, 0.0  ;;  %v638_v19 = vrot.slane %v637_v50, 4 }
 0x152   :  { %v532_v24 = vpop.f32.mrf.mxu3 }
 0x153   :  { %v1436_v25 = vadd.f32 %v759_v11, %v757_v21  ;;  %v1438_v26 = vadd.f32 %v772_v12, %v770_v22  ;;  %v405_v37 = vpop.f32.mrf.mxu0  ;;  %v533_v3 = vadd.f32 %v532_v24, %v443_v23  ;;  %v652_v39 = vmul.f32 %v648_v29, %v1394_v4 }
 0x154   :  { %v494_v27 = vpop.f32.mrf.mxu1  ;;  %v665_v43 = vmul.f32 %v648_v29, %v1405_v10  ;;  %v609_v12 = vrot.slane %v608_v7, 4 }
 0x155   :  { %v495_v28 = vadd.f32 %v494_v27, %v405_v37  ;;  %v780_v6 = vadd.f32 %v1388_v58, %v533_v3  ;;  %v639_v3 = vadd.f32 %v638_v19, %v637_v50 }
 0x156   :  { %v610_v24 = vadd.f32 %v609_v12, %v608_v7 }
 0x157   :  { %v645_v33 = vadd.f32 %v1396_v8, %v495_v28  ;;  %v784_v44 = vmax.f32 %v780_v6, 0.0 }
 0x159   :  { %v445_v34 = vpop.f32.mrf.mxu2  ;;  %v649_v35 = vmax.f32 %v645_v33, 0.0  ;;  %v788_v51 = vmul.f32 %v784_v44, %v1394_v4  ;;  %v801_v52 = vmul.f32 %v784_v44, %v1405_v10 }
 0x15a   :  { %v534_v38 = vpop.f32.mrf.mxu3 }
 0x15b   :  { %v535_v40 = vadd.f32 %v534_v38, %v445_v34  ;;  %v408_v41 = vpop.f32.mrf.mxu0  ;;  %v653_v45 = vmul.f32 %v649_v35, %v1399_v13  ;;  %v666_v46 = vmul.f32 %v649_v35, %v1401_v17 }
 0x15c   :  { %v497_v31 = vpop.f32.mrf.mxu1 }
 0x15d   :  { %v781_v47 = vadd.f32 %v1396_v8, %v535_v40  ;;  %v498_v32 = vadd.f32 %v497_v31, %v408_v41  ;;  %v656_v48 = vadd.f32 %v653_v45, %v652_v39  ;;  %v669_v49 = vadd.f32 %v666_v46, %v665_v43 }
 0x15e   :  { %v611_v40 = vrot.slane %v610_v24, 2  ;;  %v640_v43 = vrot.slane %v639_v3, 2 }
 0x15f   :  { %v785_v5 = vmax.f32 %v781_v47, 0.0  ;;  %v646_v15 = vadd.f32 %v1390_v59, %v498_v32 }
 0x160   :  { %v612_v45 = vadd.f32 %v611_v40, %v610_v24  ;;  %v641_v32 = vadd.f32 %v640_v43, %v639_v3  ;;  %v761_v43 = vrot.slane %v1436_v25, 4 }
 0x161   :  { %v789_v53 = vmul.f32 %v785_v5, %v1399_v13  ;;  %v802_v54 = vmul.f32 %v785_v5, %v1401_v17  ;;  %v650_v57 = vmax.f32 %v646_v15, 0.0  ;;  %v448_v2 = vpop.f32.mrf.mxu2 }
 0x162   :  { %v537_v61 = vpop.f32.mrf.mxu3 }
 0x163   :  { %v792_v62 = vadd.f32 %v789_v53, %v788_v51  ;;  %v805_v63 = vadd.f32 %v802_v54, %v801_v52  ;;  %v654_v0 = vmul.f32 %v650_v57, %v1412_v30  ;;  %v667_v1 = vmul.f32 %v650_v57, %v1416_v36  ;;  %v410_v14 = vpop.f32.mrf.mxu0 }
 0x164   :  { %v538_v9 = vadd.f32 %v537_v61, %v448_v2  ;;  %v499_v11 = vpop.f32.mrf.mxu1  ;;  %v613_v54 = vrot.slane %v612_v45, 1  ;;  %v642_v57 = vrot.slane %v641_v32, 1 }
 0x165   :  { %v657_v16 = vadd.f32 %v656_v48, %v654_v0  ;;  %v670_v18 = vadd.f32 %v669_v49, %v667_v1  ;;  %v500_v20 = vadd.f32 %v499_v11, %v410_v14 }
 0x166   :  { %v782_v21 = vadd.f32 %v1390_v59, %v538_v9  ;;  %v614_v1 = vadd.f32 %v613_v54, %v612_v45  ;;  %v643_v9 = vadd.f32 %v642_v57, %v641_v32 }
 0x167   :  { %v647_v22 = vadd.f32 %v1392_v60, %v500_v20 }
 0x168   :  { %v786_v23 = vmax.f32 %v782_v21, 0.0 }
 0x169   :  { %v651_v42 = vmax.f32 %v647_v22, 0.0  ;;  %v450_v37 = vpop.f32.mrf.mxu2 }
 0x16a   :  { %v790_v27 = vmul.f32 %v786_v23, %v1412_v30  ;;  %v803_v28 = vmul.f32 %v786_v23, %v1416_v36  ;;  %v539_v29 = vpop.f32.mrf.mxu3 }
 0x16b   :  { %v655_v6 = vmul.f32 %v651_v42, %v1427_v56  ;;  %v668_v33 = vmul.f32 %v651_v42, %v1425_v55  ;;  %v413_v34 = vpop.f32.mrf.mxu0  ;;  %v540_v22 = vadd.f32 %v539_v29, %v450_v37 }
 0x16c   :  { %v1461_v35 = vadd.f32 %v792_v62, %v790_v27  ;;  %v1463_v38 = vadd.f32 %v805_v63, %v803_v28  ;;  %v502_v39 = vpop.f32.mrf.mxu1 }
 0x16d   :  { %v658_v7 = vadd.f32 %v657_v16, %v655_v6  ;;  %v671_v41 = vadd.f32 %v670_v18, %v668_v33  ;;  %v503_v42 = vadd.f32 %v502_v39, %v413_v34  ;;  %v783_v27 = vadd.f32 %v1392_v60, %v540_v22 }
 0x16e   :  { %v774_v39 = vrot.slane %v1438_v26, 4 }
 0x16f   :  { %v659_v50 = vrot.slane %v658_v7, 4  ;;  %v672_v44 = vrot.slane %v671_v41, 4  ;;  %v678_v40 = vadd.f32 %v1388_v58, %v503_v42 }
 0x171   :  { %v660_v46 = vadd.f32 %v659_v50, %v658_v7  ;;  %v673_v31 = vadd.f32 %v672_v44, %v671_v41  ;;  %v453_v47 = vpop.f32.mrf.mxu2  ;;  %v787_v44 = vmax.f32 %v783_v27, 0.0  ;;  %v682_v45 = vmax.f32 %v678_v40, 0.0 }
 0x172   :  { %v542_v48 = vpop.f32.mrf.mxu3 }
 0x173   :  { %v661_v49 = vrot.slane %v660_v46, 2  ;;  %v674_v5 = vrot.slane %v673_v31, 2  ;;  %v415_v15 = vpop.f32.mrf.mxu0  ;;  %v791_v32 = vmul.f32 %v787_v44, %v1427_v56  ;;  %v686_v54 = vmul.f32 %v682_v45, %v1394_v4 }
 0x174   :  { %v504_v51 = vpop.f32.mrf.mxu1  ;;  %v543_v57 = vadd.f32 %v542_v48, %v453_v47 }
 0x175   :  { %v662_v52 = vadd.f32 %v661_v49, %v660_v46  ;;  %v675_v53 = vadd.f32 %v674_v5, %v673_v31  ;;  %v505_v23 = vadd.f32 %v504_v51, %v415_v15  ;;  %v762_v31 = vadd.f32 %v761_v43, %v1436_v25 }
 0x176   :  { %v804_v49 = vmul.f32 %v787_v44, %v1425_v55 }
 0x177   :  { %v663_v2 = vrot.slane %v662_v52, 1  ;;  %v676_v61 = vrot.slane %v675_v53, 1  ;;  %v679_v28 = vadd.f32 %v1396_v8, %v505_v23  ;;  %v814_v23 = vadd.f32 %v1388_v58, %v543_v57 }
 0x179   :  { %v664_v62 = vadd.f32 %v663_v2, %v662_v52  ;;  %v677_v63 = vadd.f32 %v676_v61, %v675_v53  ;;  %v455_v0 = vpop.f32.mrf.mxu2  ;;  %v683_v37 = vmax.f32 %v679_v28, 0.0  ;;  %v775_v53 = vadd.f32 %v774_v39, %v1438_v26 }
 0x17a   :  { %v544_v14 = vpop.f32.mrf.mxu3  ;;  %v699_v26 = vmul.f32 %v682_v45, %v1405_v10 }
 0x17b   :  { %v418_v11 = vpop.f32.mrf.mxu0  ;;  %v1465_v12 = vsel %vm882_vm0, %v614_v1, %v664_v62  ;;  %v1467_v18 = vsel %vm882_vm0, %v643_v9, %v677_v63  ;;  %v687_v5 = vmul.f32 %v683_v37, %v1399_v13  ;;  %v545_v51 = vadd.f32 %v544_v14, %v455_v0 }
 0x17c   :  { %v507_v16 = vpop.f32.mrf.mxu1  ;;  %v763_v62 = vrot.slane %v762_v31, 2  ;;  %v700_v25 = vmul.f32 %v683_v37, %v1401_v17  ;;  %v794_v9 = vadd.f32 %v1461_v35, %v791_v32  ;;  %v776_v22 = vrot.slane %v775_v53, 2 }
 0x17d   :  { %v508_v3 = vadd.f32 %v507_v16, %v418_v11  ;;  %v807_v11 = vadd.f32 %v1463_v38, %v804_v49  ;;  %v690_v16 = vadd.f32 %v687_v5, %v686_v54  ;;  %v815_v47 = vadd.f32 %v1396_v8, %v545_v51 }
 0x17e   :  { %v703_v35 = vadd.f32 %v700_v25, %v699_v26  ;;  %v795_v42 = vrot.slane %v794_v9, 4 }
 0x17f   :  { %v680_v7 = vadd.f32 %v1390_v59, %v508_v3  ;;  %v808_v3 = vrot.slane %v807_v11, 4 }
 0x181   :  { %v458_v20 = vpop.f32.mrf.mxu2  ;;  %v684_v46 = vmax.f32 %v680_v7, 0.0  ;;  %v1499_v32 = vadd.f32 %v808_v3, %v807_v11 }
 0x182   :  { %v547_v19 = vpop.f32.mrf.mxu3 }
 0x183   :  { %v420_v21 = vpop.f32.mrf.mxu0  ;;  %v688_v2 = vmul.f32 %v684_v46, %v1412_v30  ;;  %v548_v63 = vadd.f32 %v547_v19, %v458_v20  ;;  %v701_v48 = vmul.f32 %v684_v46, %v1416_v36  ;;  %v1491_v19 = vadd.f32 %v763_v62, %v762_v31 }
 0x184   :  { %v509_v24 = vpop.f32.mrf.mxu1  ;;  %v796_v31 = vadd.f32 %v795_v42, %v794_v9  ;;  %v810_v42 = vrot.slane %v1499_v32, 2 }
 0x185   :  { %v510_v6 = vadd.f32 %v509_v24, %v420_v21  ;;  %v691_v20 = vadd.f32 %v690_v16, %v688_v2  ;;  %v816_v38 = vadd.f32 %v1390_v59, %v548_v63  ;;  %v704_v40 = vadd.f32 %v703_v35, %v701_v48 }
 0x186   :  { %v765_v37 = vrot.slane %v1491_v19, 1 }
 0x187   :  { %v681_v29 = vadd.f32 %v1392_v60, %v510_v6  ;;  %v819_v6 = vmax.f32 %v815_v47, 0.0  ;;  %v820_v39 = vmax.f32 %v816_v38, 0.0 }
 0x189   :  { %v460_v33 = vpop.f32.mrf.mxu2  ;;  %v685_v15 = vmax.f32 %v681_v29, 0.0  ;;  %v1497_v29 = vadd.f32 %v776_v22, %v775_v53  ;;  %v823_v51 = vmul.f32 %v819_v6, %v1399_v13  ;;  %v836_v54 = vmul.f32 %v819_v6, %v1401_v17 }
 0x18a   :  { %v549_v41 = vpop.f32.mrf.mxu3  ;;  %v824_v25 = vmul.f32 %v820_v39, %v1412_v30  ;;  %v837_v63 = vmul.f32 %v820_v39, %v1416_v36 }
 0x18b   :  { %v423_v50 = vpop.f32.mrf.mxu0  ;;  %v689_v0 = vmul.f32 %v685_v15, %v1427_v56  ;;  %v550_v21 = vadd.f32 %v549_v41, %v460_v33  ;;  %v702_v24 = vmul.f32 %v685_v15, %v1425_v55  ;;  %v818_v41 = vmax.f32 %v814_v23, 0.0 }
 0x18c   :  { %v512_v34 = vpop.f32.mrf.mxu1  ;;  %v778_v11 = vrot.slane %v1497_v29, 1  ;;  %v797_v23 = vrot.slane %v796_v31, 2 }
 0x18d   :  { %v692_v27 = vadd.f32 %v691_v20, %v689_v0  ;;  %v817_v7 = vadd.f32 %v1392_v60, %v550_v21  ;;  %v513_v43 = vadd.f32 %v512_v34, %v423_v50  ;;  %v705_v45 = vadd.f32 %v704_v40, %v702_v24 }
 0x18e   :  { %v822_v57 = vmul.f32 %v818_v41, %v1394_v4  ;;  %v835_v53 = vmul.f32 %v818_v41, %v1405_v10 }
 0x18f   :  { %v693_v49 = vrot.slane %v692_v27, 4  ;;  %v821_v50 = vmax.f32 %v817_v7, 0.0  ;;  %v712_v2 = vadd.f32 %v1388_v58, %v513_v43 }
 0x190   :  { %v826_v26 = vadd.f32 %v823_v51, %v822_v57  ;;  %v839_v47 = vadd.f32 %v836_v54, %v835_v53 }
 0x191   :  { %v463_v52 = vpop.f32.mrf.mxu2  ;;  %v694_v16 = vadd.f32 %v693_v49, %v692_v27  ;;  %v825_v48 = vmul.f32 %v821_v50, %v1427_v56  ;;  %v838_v21 = vmul.f32 %v821_v50, %v1425_v55  ;;  %v716_v20 = vmax.f32 %v712_v2, 0.0 }
 0x192   :  { %v552_v61 = vpop.f32.mrf.mxu3  ;;  %v827_v3 = vadd.f32 %v826_v26, %v824_v25 }
 0x193   :  { %v425_v1 = vpop.f32.mrf.mxu0  ;;  %v553_v0 = vadd.f32 %v552_v61, %v463_v52  ;;  %v695_v61 = vrot.slane %v694_v16, 2  ;;  %v720_v39 = vmul.f32 %v716_v20, %v1394_v4 }
 0x194   :  { %v514_v14 = vpop.f32.mrf.mxu1  ;;  %v828_v41 = vadd.f32 %v827_v3, %v825_v48 }
 0x195   :  { %v515_v28 = vadd.f32 %v514_v14, %v425_v1  ;;  %v706_v1 = vrot.slane %v705_v45, 4  ;;  %v848_v6 = vadd.f32 %v1388_v58, %v553_v0  ;;  %v733_v58 = vmul.f32 %v716_v20, %v1405_v10 }
 0x196   :  { %v696_v53 = vadd.f32 %v695_v61, %v694_v16  ;;  %v829_v2 = vrot.slane %v828_v41, 4 }
 0x197   :  { %v713_v5 = vadd.f32 %v1396_v8, %v515_v28  ;;  %v840_v28 = vadd.f32 %v839_v47, %v837_v63  ;;  %v707_v27 = vadd.f32 %v706_v1, %v705_v45  ;;  %v852_v50 = vmax.f32 %v848_v6, 0.0 }
 0x198   :  { %v697_v6 = vrot.slane %v696_v53, 1 }
 0x199   :  { %v465_v33 = vpop.f32.mrf.mxu2  ;;  %v717_v14 = vmax.f32 %v713_v5, 0.0  ;;  %v841_v43 = vadd.f32 %v840_v28, %v838_v21  ;;  %v1521_v5 = vadd.f32 %v797_v23, %v796_v31  ;;  %v708_v54 = vrot.slane %v707_v27, 2 }
 0x19a   :  { %v554_v44 = vpop.f32.mrf.mxu3  ;;  %v856_v21 = vmul.f32 %v852_v50, %v1394_v4  ;;  %v869_v16 = vmul.f32 %v852_v50, %v1405_v10 }
 0x19b   :  { %v428_v46 = vpop.f32.mrf.mxu0  ;;  %v555_v62 = vadd.f32 %v554_v44, %v465_v33  ;;  %v721_v40 = vmul.f32 %v717_v14, %v1399_v13  ;;  %v734_v44 = vmul.f32 %v717_v14, %v1401_v17  ;;  %v842_v1 = vrot.slane %v841_v43, 4 }
 0x19c   :  { %v517_v15 = vpop.f32.mrf.mxu1  ;;  %v709_v20 = vadd.f32 %v708_v54, %v707_v27 }
 0x19d   :  { %v518_v34 = vadd.f32 %v517_v15, %v428_v46  ;;  %v849_v35 = vadd.f32 %v1396_v8, %v555_v62  ;;  %v737_v62 = vadd.f32 %v734_v44, %v733_v58 }
 0x19f   :  { %v714_v9 = vadd.f32 %v1390_v59, %v518_v34  ;;  %v853_v46 = vmax.f32 %v849_v35, 0.0  ;;  %v724_v34 = vadd.f32 %v721_v40, %v720_v39 }
 0x1a1   :  { %v468_v22 = vpop.f32.mrf.mxu2  ;;  %v718_v38 = vmax.f32 %v714_v9, 0.0  ;;  %v870_v31 = vmul.f32 %v853_v46, %v1401_v17 }
 0x1a2   :  { %v557_v24 = vpop.f32.mrf.mxu3 }
 0x1a3   :  { %v430_v52 = vpop.f32.mrf.mxu0  ;;  %v558_v7 = vadd.f32 %v557_v24, %v468_v22  ;;  %v722_v49 = vmul.f32 %v718_v38, %v1412_v30  ;;  %v735_v15 = vmul.f32 %v718_v38, %v1416_v36  ;;  %v830_v38 = vadd.f32 %v829_v2, %v828_v41 }
 0x1a4   :  { %v519_v33 = vpop.f32.mrf.mxu1  ;;  %v843_v24 = vadd.f32 %v842_v1, %v841_v43  ;;  %v873_v28 = vadd.f32 %v870_v31, %v869_v16  ;;  %v799_v41 = vrot.slane %v1521_v5, 1  ;;  %v710_v43 = vrot.slane %v709_v20, 1 }
 0x1a5   :  { %v520_v8 = vadd.f32 %v519_v33, %v430_v52  ;;  %v850_v45 = vadd.f32 %v1390_v59, %v558_v7  ;;  %v857_v59 = vmul.f32 %v853_v46, %v1399_v13  ;;  %v725_v9 = vadd.f32 %v724_v34, %v722_v49 }
 0x1a6   :  { %v738_v14 = vadd.f32 %v737_v62, %v735_v15  ;;  %v766_v52 = vadd.f32 %v765_v37, %v1491_v19  ;;  %v831_v44 = vrot.slane %v830_v38, 2  ;;  %v698_v49 = vadd.f32 %v697_v6, %v696_v53 }
 0x1a7   :  { %v715_v51 = vadd.f32 %v1392_v60, %v520_v8  ;;  %v854_v57 = vmax.f32 %v850_v45, 0.0  ;;  %v860_v3 = vadd.f32 %v857_v59, %v856_v21  ;;  %v844_v8 = vrot.slane %v843_v24, 2 }
 0x1a8   :  { %v711_v15 = vadd.f32 %v710_v43, %v709_v20  ;;  %v800_v54 = vadd.f32 %v799_v41, %v1521_v5  ;;  %v885_v53 = vsel %vm884_vm1, %v1465_v12, %v698_v49 }
 0x1a9   :  { %v719_v25 = vmax.f32 %v715_v51, 0.0  ;;  %v470_v63 = vpop.f32.mrf.mxu2  ;;  %v858_v22 = vmul.f32 %v854_v57, %v1412_v30  ;;  %v871_v23 = vmul.f32 %v854_v57, %v1416_v36  ;;  %v811_v30 = vadd.f32 %v810_v42, %v1499_v32 }
 0x1aa   :  { %v559_v0 = vpop.f32.mrf.mxu3  ;;  %v779_v32 = vadd.f32 %v778_v11, %v1497_v29  ;;  %v832_v51 = vadd.f32 %v831_v44, %v830_v38  ;;  %v845_v50 = vadd.f32 %v844_v8, %v843_v24  ;;  %v903_v5 = vsel %vm884_vm1, %v1467_v18, %v711_v15 }
 0x1ab   :  { %v723_v26 = vmul.f32 %v719_v25, %v1427_v56  ;;  %v736_v47 = vmul.f32 %v719_v25, %v1425_v55  ;;  %v560_v48 = vadd.f32 %v559_v0, %v470_v63  ;;  %v861_v36 = vadd.f32 %v860_v3, %v858_v22 }
 0x1ac   :  { %v874_v27 = vadd.f32 %v873_v28, %v871_v23  ;;  %v812_v42 = vrot.slane %v811_v30, 1  ;;  %v833_v59 = vrot.slane %v832_v51, 1  ;;  %v846_v31 = vrot.slane %v845_v50, 1 }
 0x1ad   :  { %v726_v13 = vadd.f32 %v725_v9, %v723_v26  ;;  %v739_v35 = vadd.f32 %v738_v14, %v736_v47  ;;  %v851_v17 = vadd.f32 %v1392_v60, %v560_v48  ;;  %v899_v24 = vstv %s1115_s0 }
 0x1ae   :  { %v813_v29 = vadd.f32 %v812_v42, %v811_v30  ;;  %v834_v23 = vadd.f32 %v833_v59, %v832_v51  ;;  %v847_v20 = vadd.f32 %v846_v31, %v845_v50  ;;  %v913_v28 = vstv %s1117_s1 }
 0x1af   :  { %v727_v4 = vrot.slane %v726_v13, 4  ;;  %v740_v61 = vrot.slane %v739_v35, 4  ;;  %v855_v10 = vmax.f32 %v851_v17, 0.0 }
 0x1b1   :  { %v728_v40 = vadd.f32 %v727_v4, %v726_v13  ;;  %v741_v7 = vadd.f32 %v740_v61, %v739_v35  ;;  %v859_v60 = vmul.f32 %v855_v10, %v1427_v56  ;;  %v872_v33 = vmul.f32 %v855_v10, %v1425_v55 }
 0x1b3   :  { %v729_v19 = vrot.slane %v728_v40, 2  ;;  %v742_v37 = vrot.slane %v741_v7, 2  ;;  %v862_v39 = vadd.f32 %v861_v36, %v859_v60  ;;  %v875_v46 = vadd.f32 %v874_v27, %v872_v33 }
 0x1b5   :  { %v730_v45 = vadd.f32 %v729_v19, %v728_v40  ;;  %v743_v56 = vadd.f32 %v742_v37, %v741_v7  ;;  %v863_v58 = vrot.slane %v862_v39, 4  ;;  %v876_v55 = vrot.slane %v875_v46, 4 }
 0x1b7   :  { %v731_v34 = vrot.slane %v730_v45, 1  ;;  %v744_v57 = vrot.slane %v743_v56, 1  ;;  %v864_v2 = vadd.f32 %v863_v58, %v862_v39  ;;  %v877_v62 = vadd.f32 %v876_v55, %v875_v46 }
 0x1b9   :  { %v732_v11 = vadd.f32 %v731_v34, %v730_v45  ;;  %v745_v25 = vadd.f32 %v744_v57, %v743_v56  ;;  %v865_v63 = vrot.slane %v864_v2, 2  ;;  %v878_v1 = vrot.slane %v877_v62, 2 }
 0x1bb   :  { %v866_v9 = vadd.f32 %v865_v63, %v864_v2  ;;  %v887_v0 = vsel %vm886_vm2, %v885_v53, %v732_v11  ;;  %v879_v14 = vadd.f32 %v878_v1, %v877_v62  ;;  %v904_v26 = vsel %vm886_vm2, %v903_v5, %v745_v25 }
 0x1bc   :  { %v889_v47 = vsel %vm888_vm3, %v887_v0, %v766_v52  ;;  %v905_v12 = vsel %vm888_vm3, %v904_v26, %v779_v32 }
 0x1bd   :  { %v867_v48 = vrot.slane %v866_v9, 1  ;;  %v891_v21 = vsel %vm890_vm4, %v889_v47, %v800_v54  ;;  %v880_v16 = vrot.slane %v879_v14, 1  ;;  %v906_v22 = vsel %vm890_vm4, %v905_v12, %v813_v29 }
 0x1be   :  { %v893_v35 = vsel %vm892_vm5, %v891_v21, %v834_v23  ;;  %v907_v17 = vsel %vm892_vm5, %v906_v22, %v847_v20 }
 0x1bf   :  { %v868_v13 = vadd.f32 %v867_v48, %v866_v9  ;;  %v881_v18 = vadd.f32 %v880_v16, %v879_v14 }
 0x1c1   :  { %v895_v38 = vsel %vm894_vm6, %v893_v35, %v868_v13  ;;  %v908_v3 = vsel %vm894_vm6, %v907_v17, %v881_v18 }
 0x1c2   :  { %v901_v52 = vadd.f32 %v899_v24, %v895_v38  ;;  %v915_v4 = vadd.f32 %v913_v28, %v908_v3 }
 0x1c4   :  { %916 = vst [vmem:[#allocation5] sm:$0xff] %v901_v52 }
 0x1c5   :  { %918 = vst [vmem:[#allocation5 + $0x8] sm:$0xff] %v915_v4 }
 0x1c6   :  { %931 = dma.vmem_to_hbm [thread:$0]  %s924_s30, 256, %s926_s6, [#allocation4], %s1192_s17, %s1192_s17, %s1193_s18  }
 0x1c7   :  { %1189 = dma.done.wait [#allocation4], 256  }
 0x1c8   :  { %1190 = vsyncadd [#allocation4], 4294967040 }
 0x1c9   :  { %936 = vsyncpa [#allocation3], 1 }
 0x1ca   :  { %937 = vsyncpa [#allocation4], 1 }

</bundles_post_ra>
